<compile_context>
chip_gen: v7x
topology: tpu7x:2x2x1
jax: 0.10.0
libtpu: 0.0.40
codegen_flags: <defaults>
</compile_context>

<pallas_src>
import functools

import jax
import jax.numpy as jnp
from jax import lax
from jax.experimental import pallas as pl
from jax.experimental.pallas import tpu as pltpu

LN_EPS = 1e-5      # nn.LayerNorm default
HEAD_DIM = 64      # Difference_Module hardcodes dim = 64
MLP_RATIO = 4.0


def _layernorm(x, gamma, beta):
    mu = jnp.mean(x, axis=-1, keepdims=True)
    var = jnp.mean((x - mu) ** 2, axis=-1, keepdims=True)
    return (x - mu) * lax.rsqrt(var + LN_EPS) * gamma + beta


def _gelu_exact(x):
    # PyTorch nn.GELU default = exact erf-based GELU
    return 0.5 * x * (1.0 + lax.erf(x * (2.0 ** -0.5)))


# ----------------------------------------------------------------------------
# Kernel 1: LayerNorm + qkv Linear   (out = LN(x) @ W + b), row-tiled
# ----------------------------------------------------------------------------
def ln_qkv_kernel(x_ref, g_ref, b_ref, w_ref, bias_ref, o_ref):
    xn = _layernorm(x_ref[...], g_ref[...], b_ref[...])          # f32 (TM, C)
    o_ref[...] = (
        jnp.dot(xn.astype(jnp.bfloat16), w_ref[...],             # bf16 x bf16 MXU
                preferred_element_type=jnp.float32)
        + bias_ref[...]
    )


def _pick_row_tile(m, candidates=(256, 128, 64, 32, 16, 8)):
    for t in candidates:
        if m % t == 0:
            return t
    return m


def ln_qkv(x, gamma, beta, w_bf16, b):
    R, N, C = x.shape                      # R = 2B (vis & inf stacked on batch)
    M = R * N
    TM = _pick_row_tile(M)
    x2 = x.reshape(M, C)
    out = pl.pallas_call(
        ln_qkv_kernel,
        out_shape=jax.ShapeDtypeStruct((M, 3 * C), jnp.float32),
        grid=(M // TM,),
        in_specs=[
            pl.BlockSpec((TM, C), lambda i: (i, 0)),
            pl.BlockSpec((1, C), lambda i: (0, 0)),
            pl.BlockSpec((1, C), lambda i: (0, 0)),
            pl.BlockSpec((C, 3 * C), lambda i: (0, 0)),          # weight resident
            pl.BlockSpec((1, 3 * C), lambda i: (0, 0)),
        ],
        out_specs=pl.BlockSpec((TM, 3 * C), lambda i: (i, 0)),
        compiler_params=pltpu.CompilerParams(
            dimension_semantics=("parallel",)),
    )(x2, gamma.reshape(1, C), beta.reshape(1, C), w_bf16, b.reshape(1, 3 * C))
    return out.reshape(R, N, 3 * C)


# ----------------------------------------------------------------------------
# Kernel 2: both Difference_Modules, one (branch, batch) slice per grid step
# ----------------------------------------------------------------------------
def diim_pair_kernel(q_ref, k_ref, v_ref,
                     wp_ref, bp_ref, g_ref, be_ref,
                     w1_ref, b1_ref, w2_ref, b2_ref,
                     o_ref, *, num_heads, head_dim, scale):
    H, D = num_heads, head_dim
    q = q_ref[0]                                    # (N, C) f32, lane-dense
    k = k_ref[0]
    v = v_ref[0]
    N = q.shape[0]

    wp = wp_ref[0]                                  # (D, D) bf16
    bp = bp_ref[0]                                  # (1, D) f32
    g = g_ref[0]
    be = be_ref[0]
    w1 = w1_ref[0]                                  # (D, hidden) bf16
    b1 = b1_ref[0]
    w2 = w2_ref[0]                                  # (hidden, D) bf16
    b2 = b2_ref[0]

    # ---- per-head attention difference (unrolled; H is small) ----
    dif_rows = []
    q_rows = []
    for h in range(H):
        lo, hi = h * D, (h + 1) * D
        q_h = q[:, lo:hi]                           # (N, D)
        k_h = k[:, lo:hi]
        v_h = v[:, lo:hi]
        # scale folded into q; contract D directly (no explicit .T)
        scores = lax.dot_general(
            (q_h * scale).astype(jnp.bfloat16),
            k_h.astype(jnp.bfloat16),
            dimension_numbers=(((1,), (1,)), ((), ())),
            preferred_element_type=jnp.float32)     # (N, N)
        scores = scores - jnp.max(scores, axis=-1, keepdims=True)
        p = jnp.exp(scores)
        p = p * pl.reciprocal(jnp.sum(p, axis=-1, keepdims=True), approx=True)
        av = jnp.dot(p.astype(jnp.bfloat16), v_h.astype(jnp.bfloat16),
                     preferred_element_type=jnp.float32)          # (N, D)
        dif_rows.append(v_h - av)
        q_rows.append(q_h)

    # ---- dif_proj / residual / LN / MLP batched over all heads: (H*N, D) ----
    dif = jnp.concatenate(dif_rows, axis=0) if H > 1 else dif_rows[0]
    q_all = jnp.concatenate(q_rows, axis=0) if H > 1 else q_rows[0]

    proj = jnp.dot(dif.astype(jnp.bfloat16), wp,
                   preferred_element_type=jnp.float32) + bp
    qv = q_all + proj                               # residual 1
    xn = _layernorm(qv, g, be)
    h1 = _gelu_exact(jnp.dot(xn.astype(jnp.bfloat16), w1,
                             preferred_element_type=jnp.float32) + b1)
    mlp = jnp.dot(h1.astype(jnp.bfloat16), w2,
                  preferred_element_type=jnp.float32) + b2
    out = mlp + qv                                  # residual 2, (H*N, D)

    # ---- assemble lane-dense (N, C) slab (== dif.transpose(1,2).reshape) ----
    if H > 1:
        slab = jnp.concatenate([out[h * N:(h + 1) * N, :] for h in range(H)],
                               axis=-1)
    else:
        slab = out
    o_ref[0, 0] = slab


def diim_pair(qkv, B, N, C, H, dp):
    D = C // H
    hidden = dp["w1"].shape[-1]
    scale = float(HEAD_DIM) ** -0.5                 # module uses head_dim = 64

    kern = functools.partial(diim_pair_kernel,
                             num_heads=H, head_dim=D, scale=scale)

    def wspec(shape):
        return pl.BlockSpec(shape, lambda d, b: (d, 0, 0))

    # qkv rows: 0..B-1 = vis, B..2B-1 = inf.  d=0 -> DIIM1(q_vis, k_inf, v_inf),
    # d=1 -> DIIM2(q_inf, k_vis, v_vis).  Last axis blocks of width C: 0=q,1=k,2=v.
    out = pl.pallas_call(
        kern,
        out_shape=jax.ShapeDtypeStruct((2, B, N, C), jnp.float32),
        grid=(2, B),
        in_specs=[
            pl.BlockSpec((1, N, C), lambda d, b: (d * B + b, 0, 0)),        # q (own)
            pl.BlockSpec((1, N, C), lambda d, b: ((1 - d) * B + b, 0, 1)),  # k (other)
            pl.BlockSpec((1, N, C), lambda d, b: ((1 - d) * B + b, 0, 2)),  # v (other)
            wspec((1, D, D)),        # wp
            wspec((1, 1, D)),        # bp
            wspec((1, 1, D)),        # ln gamma
            wspec((1, 1, D)),        # ln beta
            wspec((1, D, hidden)),   # w1
            wspec((1, 1, hidden)),   # b1
            wspec((1, hidden, D)),   # w2
            wspec((1, 1, D)),        # b2
        ],
        out_specs=pl.BlockSpec((1, 1, N, C), lambda d, b: (d, b, 0, 0)),
        compiler_params=pltpu.CompilerParams(
            dimension_semantics=("parallel", "parallel")),
    )(qkv, qkv, qkv,
      dp["wp"], dp["bp"], dp["g"], dp["b"],
      dp["w1"], dp["b1"], dp["w2"], dp["b2"])
    return out


# ----------------------------------------------------------------------------
# Full Difference forward
# ----------------------------------------------------------------------------
def difference_forward(x_vis, x_inf, params, num_heads):
    B, N, C = x_vis.shape
    H = num_heads
    D = C // H
    assert D == HEAD_DIM, "Difference_Module hardcodes head_dim = 64"

    # one stacked tensor so a single pallas_call covers vis and inf
    x = jnp.concatenate([x_vis, x_inf], axis=0)                  # (2B, N, C)

    # pre-cast GEMM weights to bf16 (MXU-native, half the weight DMA);
    # biases / LayerNorm params stay f32
    qkv_w = params["qkv_w"].astype(jnp.bfloat16)
    dp = dict(params["diim"])
    for kname in ("wp", "w1", "w2"):
        dp[kname] = dp[kname].astype(jnp.bfloat16)

    qkv = ln_qkv(x, params["ln_g"], params["ln_b"], qkv_w,
                 params["qkv_b"])                                # (2B, N, 3C)

    out = diim_pair(qkv, B, N, C, H, dp)                         # (2, B, N, C)
    return out[0], out[1]


# ----------------------------------------------------------------------------
# Deterministic parameter construction (synthetic, no checkpoint)
# ----------------------------------------------------------------------------
def make_params(key, dim):
    D = HEAD_DIM
    hidden = int(D * MLP_RATIO)
    k_qkv, k_wp, k_w1, k_w2 = jax.random.split(key, 4)
    std = 0.02
    return {
        "ln_g": jnp.ones((dim,), jnp.float32),
        "ln_b": jnp.zeros((dim,), jnp.float32),
        "qkv_w": jax.random.normal(k_qkv, (dim, 3 * dim), jnp.float32) * std,
        "qkv_b": jnp.zeros((3 * dim,), jnp.float32),
        # leading axis of 2 = (DIIM1, DIIM2), selected by the grid's first axis
        "diim": {
            "wp": jax.random.normal(k_wp, (2, D, D), jnp.float32) * std,
            "bp": jnp.zeros((2, 1, D), jnp.float32),
            "g": jnp.ones((2, 1, D), jnp.float32),
            "b": jnp.zeros((2, 1, D), jnp.float32),
            "w1": jax.random.normal(k_w1, (2, D, hidden), jnp.float32) * std,
            "b1": jnp.zeros((2, 1, hidden), jnp.float32),
            "w2": jax.random.normal(k_w2, (2, hidden, D), jnp.float32) * std,
            "b2": jnp.zeros((2, 1, D), jnp.float32),
        },
    }


if __name__ == "__main__":
    # head_dim must be 64 (Difference_Module hardcodes dim=64), so C = H * 64.
    B, N, num_heads = 2, 128, 2
    C = num_heads * HEAD_DIM   # 128

    key = jax.random.PRNGKey(0)
    kx, ky, kp = jax.random.split(key, 3)
    x_vis = jax.random.normal(kx, (B, N, C), jnp.float32)
    x_inf = jax.random.normal(ky, (B, N, C), jnp.float32)
    params = make_params(kp, C)

    out1, out2 = difference_forward(x_vis, x_inf, params, num_heads)
    jax.block_until_ready((out1, out2))

    assert out1.shape == (B, N, C) and out2.shape == (B, N, C)
    assert jnp.all(jnp.isfinite(out1)) and jnp.all(jnp.isfinite(out2))
    print("KERNEL_OK")
</pallas_src>

<mosaic_0001>
module attributes {stable_mosaic.version = 11 : i64} {
  func.func @ln_qkv_kernel(%arg0: i32, %arg1: memref<256x128xf32, #tpu.memory_space<vmem>>, %arg2: memref<1x128xf32, #tpu.memory_space<vmem>>, %arg3: memref<1x128xf32, #tpu.memory_space<vmem>>, %arg4: memref<128x384xbf16, #tpu.memory_space<vmem>>, %arg5: memref<1x384xf32, #tpu.memory_space<vmem>>, %arg6: memref<256x384xf32, #tpu.memory_space<vmem>>) attributes {dimension_semantics = [#tpu.dimension_semantics<parallel>], iteration_bounds = array<i64: 2>, scalar_prefetch = 0 : i64, scratch_operands = 0 : i64, tpu.core_type = #tpu.core_type<tc>, window_params = [{transform_indices = @transform_0, window_bounds = array<i64: 256, 128>}, {pipeline_mode = #tpu.pipeline_mode<synchronous>, transform_indices = @transform_1, window_bounds = array<i64: 1, 128>}, {pipeline_mode = #tpu.pipeline_mode<synchronous>, transform_indices = @transform_2, window_bounds = array<i64: 1, 128>}, {pipeline_mode = #tpu.pipeline_mode<synchronous>, transform_indices = @transform_3, window_bounds = array<i64: 128, 384>}, {pipeline_mode = #tpu.pipeline_mode<synchronous>, transform_indices = @transform_4, window_bounds = array<i64: 1, 384>}, {transform_indices = @transform_5, window_bounds = array<i64: 256, 384>}]} {
    %c0 = arith.constant 0 : index
    %c0_0 = arith.constant 0 : index
    %0 = vector.load %arg1[%c0, %c0_0] : memref<256x128xf32, #tpu.memory_space<vmem>>, vector<256x128xf32>
    %c0_1 = arith.constant 0 : index
    %c0_2 = arith.constant 0 : index
    %1 = vector.load %arg2[%c0_1, %c0_2] : memref<1x128xf32, #tpu.memory_space<vmem>>, vector<1x128xf32>
    %c0_3 = arith.constant 0 : index
    %c0_4 = arith.constant 0 : index
    %2 = vector.load %arg3[%c0_3, %c0_4] : memref<1x128xf32, #tpu.memory_space<vmem>>, vector<1x128xf32>
    %cst = arith.constant dense<0.000000e+00> : vector<256xf32>
    %3 = vector.multi_reduction <add>, %0, %cst [1] : vector<256x128xf32> to vector<256xf32>
    %4 = vector.shape_cast %3 : vector<256xf32> to vector<256x1xf32>
    %cst_5 = arith.constant 1.280000e+02 : f32
    %5 = vector.broadcast %cst_5 : f32 to vector<256x1xf32>
    %6 = arith.divf %4, %5 : vector<256x1xf32>
    %7 = vector.broadcast %6 : vector<256x1xf32> to vector<256x128xf32>
    %8 = arith.subf %0, %7 : vector<256x128xf32>
    %9 = arith.mulf %8, %8 : vector<256x128xf32>
    %cst_6 = arith.constant dense<0.000000e+00> : vector<256xf32>
    %10 = vector.multi_reduction <add>, %9, %cst_6 [1] : vector<256x128xf32> to vector<256xf32>
    %11 = vector.shape_cast %10 : vector<256xf32> to vector<256x1xf32>
    %cst_7 = arith.constant 1.280000e+02 : f32
    %12 = vector.broadcast %cst_7 : f32 to vector<256x1xf32>
    %13 = arith.divf %11, %12 : vector<256x1xf32>
    %14 = vector.broadcast %6 : vector<256x1xf32> to vector<256x128xf32>
    %15 = arith.subf %0, %14 : vector<256x128xf32>
    %cst_8 = arith.constant 9.99999974E-6 : f32
    %16 = vector.broadcast %cst_8 : f32 to vector<256x1xf32>
    %17 = arith.addf %13, %16 : vector<256x1xf32>
    %18 = math.rsqrt %17 : vector<256x1xf32>
    %19 = vector.broadcast %18 : vector<256x1xf32> to vector<256x128xf32>
    %20 = arith.mulf %15, %19 : vector<256x128xf32>
    %21 = vector.broadcast %1 : vector<1x128xf32> to vector<256x128xf32>
    %22 = arith.mulf %20, %21 : vector<256x128xf32>
    %23 = vector.broadcast %2 : vector<1x128xf32> to vector<256x128xf32>
    %24 = arith.addf %22, %23 : vector<256x128xf32>
    %25 = arith.truncf %24 : vector<256x128xf32> to vector<256x128xbf16>
    %c0_9 = arith.constant 0 : index
    %c0_10 = arith.constant 0 : index
    %26 = vector.load %arg4[%c0_9, %c0_10] : memref<128x384xbf16, #tpu.memory_space<vmem>>, vector<128x384xbf16>
    %cst_11 = arith.constant dense<0.000000e+00> : vector<256x384xf32>
    %27 = tpu.matmul %25, %26, %cst_11 {dimension_numbers = #tpu.dot_dimension_numbers<[1], [0], [0], [1], [0, 0, 1, 1], [], []>} : vector<256x128xbf16>, vector<128x384xbf16>, vector<256x384xf32> -> vector<256x384xf32>
    %c0_12 = arith.constant 0 : index
    %c0_13 = arith.constant 0 : index
    %28 = vector.load %arg5[%c0_12, %c0_13] : memref<1x384xf32, #tpu.memory_space<vmem>>, vector<1x384xf32>
    %29 = vector.broadcast %28 : vector<1x384xf32> to vector<256x384xf32>
    %30 = arith.addf %27, %29 : vector<256x384xf32>
    %c0_14 = arith.constant 0 : index
    %c0_15 = arith.constant 0 : index
    %31 = vector.load %arg6[%c0_14, %c0_15] : memref<256x384xf32, #tpu.memory_space<vmem>>, vector<256x384xf32>
    tpu.vector_store %arg6[%c0_14, %c0_15], %30 {strides = array<i32>} : memref<256x384xf32, #tpu.memory_space<vmem>>, vector<256x384xf32>,
    return
  }
  func.func @transform_0(%arg0: i32) -> (i32, i32) {
    %c0_i32 = arith.constant 0 : i32
    %c0_i32_0 = arith.constant 0 : i32
    return %arg0, %c0_i32 : i32, i32
  }
  func.func @transform_1(%arg0: i32) -> (i32, i32) {
    %c0_i32 = arith.constant 0 : i32
    %c0_i32_0 = arith.constant 0 : i32
    %c0_i32_1 = arith.constant 0 : i32
    return %c0_i32, %c0_i32_0 : i32, i32
  }
  func.func @transform_2(%arg0: i32) -> (i32, i32) {
    %c0_i32 = arith.constant 0 : i32
    %c0_i32_0 = arith.constant 0 : i32
    %c0_i32_1 = arith.constant 0 : i32
    return %c0_i32, %c0_i32_0 : i32, i32
  }
  func.func @transform_3(%arg0: i32) -> (i32, i32) {
    %c0_i32 = arith.constant 0 : i32
    %c0_i32_0 = arith.constant 0 : i32
    %c0_i32_1 = arith.constant 0 : i32
    return %c0_i32, %c0_i32_0 : i32, i32
  }
  func.func @transform_4(%arg0: i32) -> (i32, i32) {
    %c0_i32 = arith.constant 0 : i32
    %c0_i32_0 = arith.constant 0 : i32
    %c0_i32_1 = arith.constant 0 : i32
    return %c0_i32, %c0_i32_0 : i32, i32
  }
  func.func @transform_5(%arg0: i32) -> (i32, i32) {
    %c0_i32 = arith.constant 0 : i32
    %c0_i32_0 = arith.constant 0 : i32
    return %arg0, %c0_i32 : i32, i32
  }
}

</mosaic_0001>

<bundles_post_ra>
// kernel: tpu_custom_call.1
= control target key start
LH: loop header
LB: loop body
LE: loop exit
PB: predicated region body
PF: predicated region fallthrough
CT: control target
= control target key end

     0   :  { %10 = vsyncpa [#allocation3], 0  ;;  %s2791_s0 = inlined_call_operand.hbm [shape: f32[512,128], index: 0, kind: input, shape index: {}]   ;;  %s2792_s1 = inlined_call_operand.vmem [shape: f32[1,128], index: 1, kind: input, shape index: {}]   ;;  %s2793_s2 = inlined_call_operand.vmem [shape: f32[1,128], index: 2, kind: input, shape index: {}]   ;;  %s2794_s3 = inlined_call_operand.hbm [shape: bf16[128,384], index: 3, kind: input, shape index: {}]   ;;  %s2795_s4 = inlined_call_operand.vmem [shape: f32[1,384], index: 4, kind: input, shape index: {}]   ;;  %s2796_s5 = inlined_call_operand.hbm [shape: f32[512,384], index: 5, kind: output, shape index: {}]  }
   0x1   :  { %12 = vsyncpa [#allocation3 + $0x1], 0 }
   0x2   :  { %13 = vsyncpa [#allocation6], 0 }
   0x3   :  { %14 = vsyncpa [#allocation4], 0 }
   0x4   :  { %16 = vsyncpa [#allocation4 + $0x1], 0  ;;  %s1927_s18 = smov 0   ;;  %s1929_s19 = smov 0  }
   0x5   :  { %s1931_s20 = smov 0   ;;  %s1933_s21 = smov 0  }
   0x6 LB: > { %s1948_s22 = sadd.s32 4294967295, %s1885_s21   ;;  %s1465_s23 = sadd.s32 4294967294, %s1885_s21   ;;  %s1885_s21 = sphi %s1933_s21, %s2816_s21   ;;  %s1881_s20 = sphi %s1931_s20, %s2815_s20   ;;  %s1877_s19 = sphi %s1929_s19, %s2814_s19   ;;  %s1873_s18 = sphi %s1927_s18, %s2813_s18  }
   0x7   : > { %p42_p0 = scmp.ne.s32.totalorder %s1877_s19, %s1873_s18  ;;  %p2797_p1 = scmp.eq.s32.totalorder %s1948_s22, 0 }
   0x8   : > { %p156_p3 = scmp.eq.s32.totalorder %s1465_s23, 1  ;;  %p1466_p5 = scmp.ge.s32.totalorder %s1885_s21, 1 }
   0x9   : > { %p1957_p4 = por %p2797_p1, %p42_p0  ;;  %p163_p7 = scmp.lt.s32.totalorder %s1885_s21, 3 }
   0xa   : > { %p1962_p6 = por %p156_p3, %p42_p0  ;;  %s1887_s27 = smov [#allocation5]  }
   0xb   : > { %s2800_s24 = scalar_select %p1957_p4, 1, 0 }
   0xc   : > { %s2801_s25 = scalar_select %p1962_p6, 1, 0 }
   0xd   : > { %p1967_p8 = pnand %p1466_p5, %p163_p7  ;;  %s181_s28 = sshll.u32 %s1887_s27, 4  ;;  %s1971_s28 = int_to_ptr.vmem [resolvable:$true] %s181_s28 }
   0xe   : > { %s1983_s30 = sadd.s32 1, %s1885_s21   ;;  %s29_s6 = sadd.s32 1, %s1881_s20 }
   0xf   : > { %s2802_s26 = scalar_select %p1967_p8, 1, 0 }
  0x10   : > { %p1605_p9 = pneg %p1967_p8  ;;  %s26_s7 = ssub.s32 %s1885_s21, %s1983_s30 }
  0x11   : > { %s1757_s10 = scalar_lea.hbm %s2794_s3, 3072 }
  0x12   : > { %p1978_p11 = pnand %p1605_p9, %p2797_p1  ;;  %p1758_p12 = scmp.ne.s32.totalorder %s2794_s3, %s1757_s10 }
  0x13   : > { %p1764_p5 = scmp.lt.u32.totalorder %s1757_s10, %s2794_s3 }
  0x14   : > { %p1759_p13 = pneg %p1978_p11 }
  0x16   : > { %p1760_p0 = pnand %p1759_p13, %p1758_p12 }
  0x18   : > { %p1761_p3 = pneg %p1760_p0 }
  0x1a   : > { %p1766_p7 = pnand %p1764_p5, %p1761_p3 }
  0x1c   : > { %1769 = shalt.err (!%p1766_p7)
}
  0x1d   : > { %s1770_s15 = scalar_lea.vmem %s1971_s28, 3072  ;;  %p1778_p2 = scmp.lt.s32.totalorder %s1971_s28, %s1971_s28 }
  0x1e   : > { %p1771_p9 = scmp.ne.s32.totalorder %s1971_s28, %s1770_s15  ;;  %p1779_p6 = scmp.lt.s32.totalorder %s1770_s15, %s1770_s15 }
  0x20   : > { %p1773_p10 = pnand %p1771_p9, %p1759_p13  ;;  %p1780_p4 = por %p1779_p6, %p1778_p2 }
  0x22   : > { %p1774_p1 = pneg %p1773_p10 }
  0x24   : > { %p1781_p8 = pnand %p1780_p4, %p1774_p1 }
  0x26   : > { %1784 = shalt.err (!%p1781_p8)
}
  0x27   : > { %s1888_s16 = smov 192   ;;  %s1889_s17 = smov 12  }
  0x28   : > { %1608 = dma.hbm_to_vmem [thread:$0]  (!%p1978_p11), %s2794_s3, 3072, %s1971_s28, [#allocation6], %s1888_s16, %s1888_s16, %s1889_s17  }
  0x29   : > { %p27_p2 = scmp.eq.s32.totalorder %s26_s7, 0  ;;  %p36_p1 = scmp.ne.s32.totalorder %s1881_s20, %s1877_s19 }
  0x2a   : > { %p37_p4 = scmp.eq.s32.totalorder %s1885_s21, 0  ;;  %p1618_p6 = scmp.lt.s32.totalorder %s1885_s21, 2 }
  0x2b   : > { %s2014_s8 = scalar_select %p27_p2, %s1881_s20, %s29_s6  }
  0x2c   : > { %p38_p8 = por %p37_p4, %p36_p1  ;;  %p2804_p10 = scmp.eq.s32.totalorder %s1948_s22, 1 }
  0x2d   : > { %s198_s10 = sand.u32 1, %s1881_s20   ;;  %s1506_s11 = sshll.u32 %s1885_s21, 12 }
  0x2e   : > { %p2018_p12 = por %p2804_p10, %p36_p1  ;;  %s1469_s12 = sshll.u32 %s198_s10, 8 }
  0x2f   : > { %s2027_s14 = scalar_lea.hbm %s2791_s0, %s1506_s11  ;;  %s202_s28 = scalar_lea.vmem [#allocation2], %s1469_s12 }
  0x30   : > { %s209_s6 = sshll.u32 %s202_s28, 4  ;;  %p2029_p11 = pnand %p1618_p6, %p38_p8  ;;  %s2033_s6 = int_to_ptr.vmem [resolvable:$true] %s209_s6 }
  0x31   : > { %s2035_s15 = scalar_lea.sflag [#allocation3], %s198_s10  ;;  %s1785_s16 = scalar_lea.hbm %s2027_s14, 4096 }
  0x32   : > { %p1786_p13 = scmp.ne.s32.totalorder %s2027_s14, %s1785_s16  ;;  %p1787_p0 = pneg %p2029_p11 }
  0x33   : > { %s1790_s27 = scalar_lea.hbm %s2791_s0, 8192  ;;  %p1791_p7 = scmp.lt.u32.totalorder %s2027_s14, %s2791_s0 }
  0x34   : > { %p1788_p3 = pnand %p1787_p0, %p1786_p13  ;;  %p1792_p9 = scmp.lt.u32.totalorder %s1790_s27, %s1785_s16 }
  0x35   : > { %p1794_p1 = scmp.lt.u32.totalorder %s1785_s16, %s2027_s14 }
  0x36   : > { %p1789_p5 = pneg %p1788_p3  ;;  %p1793_p2 = por %p1792_p9, %p1791_p7 }
  0x38   : > { %p1795_p4 = por %p1794_p1, %p1793_p2 }
  0x3a   : > { %p1796_p6 = pnand %p1795_p4, %p1789_p5 }
  0x3c   : > { %1799 = shalt.err (!%p1796_p6)
}
  0x3d   : > { %s1800_s10 = scalar_lea.vmem %s2033_s6, 4096  ;;  %s1890_s29 = smov [#allocation2]  }
  0x3e   : > { %p1801_p8 = scmp.ne.s32.totalorder %s2033_s6, %s1800_s10  ;;  %s1805_s13 = sshll.u32 %s1890_s29, 4  ;;  %s1806_s13 = int_to_ptr.vmem [resolvable:$false] %s1805_s13 }
  0x3f   : > { %s1807_s28 = scalar_lea.vmem %s1806_s13, 8192  ;;  %p1808_p3 = scmp.lt.s32.totalorder %s2033_s6, %s1806_s13 }
  0x40   : > { %p1803_p10 = pnand %p1801_p8, %p1787_p0  ;;  %p1809_p7 = scmp.lt.s32.totalorder %s1807_s28, %s1800_s10 }
  0x42   : > { %p1804_p13 = pneg %p1803_p10  ;;  %p1810_p9 = por %p1809_p7, %p1808_p3 }
  0x44   : > { %p1811_p2 = pnand %p1810_p9, %p1804_p13 }
  0x46   : > { %1814 = shalt.err (!%p1811_p2)
}
  0x47   : > { %s1891_s16 = smov 128   ;;  %s1892_s17 = smov 8  }
  0x48   : > { %1612 = dma.hbm_to_vmem [thread:$0]  (!%p2029_p11), %s2027_s14, 4096, %s2033_s6, %s2035_s15, %s1891_s16, %s1891_s16, %s1892_s17  }
  0x49   : > { %p2807_p0 = scmp.ne.s32.totalorder %s2802_s26, 0 }
  0x4a   : > { %s2066_s23 = sand.u32 (!%p2807_p0), 1, %s1877_s19   ;;  %p2808_p5 = scmp.ne.s32.totalorder (!%p2807_p0), %s2800_s24, 0 }
  0x4b   : > { %221 = sbr.rel (%p2807_p0) target bundleno = 728 (0x2d8), region = 40  ;;  %s1473_s27 = sshll.u32 (!%p2807_p0), %s2066_s23, 8 }
  0x4c   : > { %s224_s11 = scalar_lea.sflag (!%p2807_p0), [#allocation3], %s2066_s23  ;;  %s2070_s12 = scalar_lea.vmem (!%p2807_p0), [#allocation2], %s1473_s27 }
  0x52   : > { %1860 = dma.done.wait (%p2808_p5), %s224_s11, 4096  }
  0x53   : > { %1862 = vsyncadd (%p2808_p5), %s224_s11, 4294963200  ;;  %p2809_p11 = scmp.eq.s32.totalorder %s1948_s22, 0 }
  0x55   : > { %1864 = dma.done.wait (%p2809_p11), [#allocation6], 3072   ;;  %p2810_p1 = pmov %p2809_p11 }
  0x56   : > { %v2081_v0 = vld [vmem:[%s2070_s12] sm:$0xff]  ;;  %v2089_v2 = vld [vmem:[%s2070_s12 + $0x8] sm:$0xff]  ;;  %v2097_v4 = vld [vmem:[%s2070_s12 + $0x10] sm:$0xff]  ;;  %s1595_s10 = smul.u32 768, %s2066_s23  ;;  %s1368_s27 = scalar_lea.sflag [#allocation4], %s2066_s23 }
  0x57   : > { %1866 = vsyncadd (%p2810_p1), [#allocation6], 4294964224  ;;  %v2084_v1 = vld [vmem:[%s2070_s12 + $0xc0] sm:$0xff]  ;;  %295 = vadd.xlane.f32.xlu0 %v2081_v0  ;;  %v2092_v3 = vld [vmem:[%s2070_s12 + $0xc8] sm:$0xff]  ;;  %s1596_s13 = smul.u32 12288, %s1948_s22 }
  0x58   : > { %343 = vadd.xlane.f32.xlu1 %v2084_v1  ;;  %v2100_v5 = vld [vmem:[%s2070_s12 + $0x18] sm:$0xff]  ;;  %v2105_v6 = vld [vmem:[%s2070_s12 + $0xd0] sm:$0xff]  ;;  %v2111_v8 = vld [vmem:[%s2070_s12 + $0x20] sm:$0xff]  ;;  %s2544_s29 = scalar_lea.vmem [#allocation7], %s1595_s10 }
  0x59   : > { %v2108_v7 = vld [vmem:[%s2070_s12 + $0xd8] sm:$0xff]  ;;  %v2114_v9 = vld [vmem:[%s2070_s12 + $0x28] sm:$0xff]  ;;  %v2119_v10 = vld [vmem:[%s2070_s12 + $0xe0] sm:$0xff]  ;;  %s1382_s28 = sshll.u32 %s2544_s29, 4  ;;  %s2741_s17 = scalar_lea.hbm %s2796_s5, %s1596_s13  ;;  %s2745_s28 = int_to_ptr.vmem [resolvable:$true] %s1382_s28 }
  0x5a   : > { %v2122_v11 = vld [vmem:[%s2070_s12 + $0xe8] sm:$0xff]  ;;  %v2129_v12 = vld [vmem:[%s2070_s12 + $0x30] sm:$0xff]  ;;  %v2132_v13 = vld [vmem:[%s2070_s12 + $0x38] sm:$0xff]  ;;  %s1815_s11 = scalar_lea.vmem %s2745_s28, 12288 }
  0x5b   : > { %297 = vadd.xlane.f32.xlu0 %v2089_v2  ;;  %v2137_v14 = vld [vmem:[%s2070_s12 + $0xf0] sm:$0xff]  ;;  %v2140_v15 = vld [vmem:[%s2070_s12 + $0xf8] sm:$0xff]  ;;  %v2145_v16 = vld [vmem:[%s2070_s12 + $0x40] sm:$0xff]  ;;  %p1816_p4 = scmp.ne.s32.totalorder %s2745_s28, %s1815_s11 }
  0x5c   : > { %345 = vadd.xlane.f32.xlu1 %v2092_v3  ;;  %v2148_v17 = vld [vmem:[%s2070_s12 + $0x48] sm:$0xff]  ;;  %v2153_v18 = vld [vmem:[%s2070_s12 + $0x50] sm:$0xff]  ;;  %v2156_v19 = vld [vmem:[%s2070_s12 + $0x58] sm:$0xff] }
  0x5d   : > { %v2161_v20 = vld [vmem:[%s2070_s12 + $0x60] sm:$0xff]  ;;  %v2164_v21 = vld [vmem:[%s2070_s12 + $0x68] sm:$0xff]  ;;  %v2169_v22 = vld [vmem:[%s2070_s12 + $0x70] sm:$0xff]  ;;  %p1817_p6 = pnand %p1816_p4, %p2018_p12 }
  0x5e   : > { %v2172_v23 = vld [vmem:[%s2070_s12 + $0x78] sm:$0xff]  ;;  %v2177_v24 = vld [vmem:[%s2070_s12 + $0x80] sm:$0xff]  ;;  %v2180_v25 = vld [vmem:[%s2070_s12 + $0x88] sm:$0xff] }
  0x5f   : > { %299 = vadd.xlane.f32.xlu0 %v2097_v4  ;;  %v2185_v26 = vld [vmem:[%s2070_s12 + $0x90] sm:$0xff]  ;;  %v2188_v27 = vld [vmem:[%s2070_s12 + $0x98] sm:$0xff]  ;;  %v2193_v28 = vld [vmem:[%s2070_s12 + $0xa0] sm:$0xff]  ;;  %p1818_p8 = pneg %p1817_p6 }
  0x60   : > { %301 = vadd.xlane.f32.xlu1 %v2100_v5  ;;  %v2196_v29 = vld [vmem:[%s2070_s12 + $0xa8] sm:$0xff]  ;;  %v2201_v30 = vld [vmem:[%s2070_s12 + $0xb0] sm:$0xff]  ;;  %v2204_v31 = vld [vmem:[%s2070_s12 + $0xb8] sm:$0xff]  ;;  %s1894_s12 = smov [#allocation7]  }
  0x61   : > { %v1661_v32 = vld [vmem:[#allocation5 + $0x4] ss:$12 sps:$4 sm:$0xff]   ;;  %v1663_v33 = vld [vmem:[#allocation5] ss:$12 sps:$4 sm:$0xff]   ;;  %v1664_v34 = vld [vmem:[#allocation5 + $0x1c] ss:$12 sps:$4 sm:$0xff]  }
  0x62   : > { %917 = vmatprep.subr.bf16.mxu0 %v1661_v32  ;;  %1579 = vmatprep.subr.bf16.mxu1 %v1661_v32  ;;  %s1819_s24 = sshll.u32 %s1894_s12, 4  ;;  %s1820_s24 = int_to_ptr.vmem [resolvable:$false] %s1819_s24 }
  0x63   : > { %347 = vadd.xlane.f32.xlu0 %v2105_v6  ;;  %918 = vmatpush1.bf16.msra.mxu0 %v1663_v33  ;;  %s1821_s26 = scalar_lea.vmem %s1820_s24, 24576  ;;  %p1822_p10 = scmp.lt.s32.totalorder %s2745_s28, %s1820_s24 }
  0x64   : > { %349 = vadd.xlane.f32.xlu1 %v2108_v7  ;;  %1587 = vmatpush1.bf16.msra.mxu1 %v1663_v33  ;;  %v1666_v33 = vld [vmem:[#allocation5 + $0x18] ss:$12 sps:$4 sm:$0xff]   ;;  %p1823_p13 = scmp.lt.s32.totalorder %s1821_s26, %s1815_s11 }
  0x65   : > { %919 = vmatprep.subr.bf16.mxu0 %v1664_v34  ;;  %1580 = vmatprep.subr.bf16.mxu1 %v1664_v34 }
  0x66   : > { %p1824_p3 = por %p1823_p13, %p1822_p10 }
  0x67   : > { %303 = vadd.xlane.f32.xlu0 %v2111_v8  ;;  %920 = vmatpush1.bf16.msra.mxu0 %v1666_v33 }
  0x68   : > { %305 = vadd.xlane.f32.xlu1 %v2114_v9  ;;  %1588 = vmatpush1.bf16.msra.mxu1 %v1666_v33  ;;  %p1825_p7 = pnand %p1824_p3, %p1818_p8 }
  0x6b   : > { %351 = vadd.xlane.f32.xlu0 %v2119_v10 }
  0x6c   : > { %353 = vadd.xlane.f32.xlu1 %v2122_v11 }
  0x6f   : > { %307 = vadd.xlane.f32.xlu0 %v2129_v12 }
  0x70   : > { %309 = vadd.xlane.f32.xlu1 %v2132_v13 }
  0x73   : > { %355 = vadd.xlane.f32.xlu0 %v2137_v14 }
  0x74   : > { %357 = vadd.xlane.f32.xlu1 %v2140_v15 }
  0x77   : > { %311 = vadd.xlane.f32.xlu0 %v2145_v16 }
  0x78   : > { %313 = vadd.xlane.f32.xlu1 %v2148_v17 }
  0x7b   : > { %315 = vadd.xlane.f32.xlu0 %v2153_v18 }
  0x7c   : > { %317 = vadd.xlane.f32.xlu1 %v2156_v19 }
  0x7f   : > { %319 = vadd.xlane.f32.xlu0 %v2161_v20 }
  0x80   : > { %321 = vadd.xlane.f32.xlu1 %v2164_v21 }
  0x83   : > { %323 = vadd.xlane.f32.xlu0 %v2169_v22 }
  0x84   : > { %325 = vadd.xlane.f32.xlu1 %v2172_v23 }
  0x87   : > { %327 = vadd.xlane.f32.xlu0 %v2177_v24 }
  0x88   : > { %329 = vadd.xlane.f32.xlu1 %v2180_v25 }
  0x8b   : > { %331 = vadd.xlane.f32.xlu0 %v2185_v26 }
  0x8c   : > { %333 = vadd.xlane.f32.xlu1 %v2188_v27 }
  0x8f   : > { %335 = vadd.xlane.f32.xlu0 %v2193_v28 }
  0x90   : > { %337 = vadd.xlane.f32.xlu1 %v2196_v29 }
  0x93   : > { %339 = vadd.xlane.f32.xlu0 %v2201_v30 }
  0x94   : > { %341 = vadd.xlane.f32.xlu1 %v2204_v31 }
  0xe4   : > { %v296_v35 = vpop.xlane.xlu0 %295 }
  0xe5   : > { %v344_v36 = vpop.xlane.xlu1 %343  ;;  %v360_v37 = vmul.f32 0.0078125, %v296_v35 }
  0xe6   : > { %v384_v38 = vmul.f32 0.0078125, %v344_v36 }
  0xe7   : > { %v2209_v39 = vsub.f32 %v2081_v0, %v360_v37 }
  0xe8   : > { %v2212_v40 = vsub.f32 %v2084_v1, %v384_v38  ;;  %v298_v41 = vpop.xlane.xlu0 %297 }
  0xe9   : > { %v346_v42 = vpop.xlane.xlu1 %345  ;;  %v361_v43 = vmul.f32 0.0078125, %v298_v41  ;;  %v424_v44 = vmul.f32 %v2209_v39, %v2209_v39 }
  0xea   : > { %v385_v45 = vmul.f32 0.0078125, %v346_v42  ;;  %v448_v48 = vmul.f32 %v2212_v40, %v2212_v40 }
  0xeb   : > { %v2217_v46 = vsub.f32 %v2089_v2, %v361_v43  ;;  %456 = vadd.xlane.f32.xlu0 %v424_v44 }
  0xec   : > { %v2220_v47 = vsub.f32 %v2092_v3, %v385_v45  ;;  %v300_v49 = vpop.xlane.xlu0 %299  ;;  %v1669_v45 = vld [vmem:[#allocation5 + $0x30] ss:$12 sps:$4 sm:$0xff]  }
  0xed   : > { %v302_v50 = vpop.xlane.xlu1 %301  ;;  %v362_v51 = vmul.f32 0.0078125, %v300_v49  ;;  %v425_v52 = vmul.f32 %v2217_v46, %v2217_v46 }
  0xee   : > { %v363_v53 = vmul.f32 0.0078125, %v302_v50  ;;  %v449_v56 = vmul.f32 %v2220_v47, %v2220_v47 }
  0xef   : > { %v2227_v54 = vsub.f32 %v2097_v4, %v362_v51  ;;  %504 = vadd.xlane.f32.xlu0 %v448_v48  ;;  %458 = vadd.xlane.f32.xlu1 %v425_v52  ;;  %v1670_v52 = vld [vmem:[#allocation5 + $0x4c] ss:$12 sps:$4 sm:$0xff]  }
  0xf0   : > { %v2230_v55 = vsub.f32 %v2100_v5, %v363_v53  ;;  %v348_v57 = vpop.xlane.xlu0 %347 }
  0xf1   : > { %v350_v58 = vpop.xlane.xlu1 %349  ;;  %v386_v59 = vmul.f32 0.0078125, %v348_v57  ;;  %v426_v60 = vmul.f32 %v2227_v54, %v2227_v54  ;;  %v1672_v57 = vld [vmem:[#allocation5 + $0x48] ss:$12 sps:$4 sm:$0xff]  }
  0xf2   : > { %v387_v61 = vmul.f32 0.0078125, %v350_v58  ;;  %v427_v0 = vmul.f32 %v2230_v55, %v2230_v55 }
  0xf3   : > { %v2237_v62 = vsub.f32 %v2105_v6, %v386_v59  ;;  %506 = vadd.xlane.f32.xlu1 %v449_v56  ;;  %460 = vadd.xlane.f32.xlu0 %v426_v60 }
  0xf4   : > { %v2240_v63 = vsub.f32 %v2108_v7, %v387_v61  ;;  %v304_v1 = vpop.xlane.xlu0 %303 }
  0xf5   : > { %v306_v2 = vpop.xlane.xlu1 %305  ;;  %v364_v3 = vmul.f32 0.0078125, %v304_v1  ;;  %v450_v4 = vmul.f32 %v2237_v62, %v2237_v62 }
  0xf6   : > { %v365_v5 = vmul.f32 0.0078125, %v306_v2  ;;  %v451_v7 = vmul.f32 %v2240_v63, %v2240_v63 }
  0xf7   : > { %v2247_v32 = vsub.f32 %v2111_v8, %v364_v3  ;;  %462 = vadd.xlane.f32.xlu1 %v427_v0  ;;  %508 = vadd.xlane.f32.xlu0 %v450_v4  ;;  %v1667_v8 = vld [vmem:[#allocation5 + $0x34] ss:$12 sps:$4 sm:$0xff]   ;;  %v1673_v0 = vld [vmem:[#allocation5 + $0x64] ss:$12 sps:$4 sm:$0xff]  }
  0xf8   : > { %v2250_v6 = vsub.f32 %v2114_v9, %v365_v5  ;;  %v352_v34 = vpop.xlane.xlu0 %351  ;;  %921 = vmatprep.subr.bf16.mxu0 %v1667_v8  ;;  %1581 = vmatprep.subr.bf16.mxu1 %v1667_v8  ;;  %v1675_v3 = vld [vmem:[#allocation5 + $0x60] ss:$12 sps:$4 sm:$0xff]  }
  0xf9   : > { %v354_v35 = vpop.xlane.xlu1 %353  ;;  %v388_v36 = vmul.f32 0.0078125, %v352_v34  ;;  %v428_v37 = vmul.f32 %v2247_v32, %v2247_v32  ;;  %922 = vmatpush1.bf16.msra.mxu0 %v1669_v45  ;;  %1589 = vmatpush1.bf16.msra.mxu1 %v1669_v45  ;;  %v1676_v34 = vld [vmem:[#allocation5 + $0x7c] ss:$12 sps:$4 sm:$0xff]  }
  0xfa   : > { %v389_v38 = vmul.f32 0.0078125, %v354_v35  ;;  %v429_v42 = vmul.f32 %v2250_v6, %v2250_v6  ;;  %923 = vmatprep.subr.bf16.mxu0 %v1670_v52  ;;  %1582 = vmatprep.subr.bf16.mxu1 %v1670_v52 }
  0xfb   : > { %v2257_v41 = vsub.f32 %v2119_v10, %v388_v36  ;;  %510 = vadd.xlane.f32.xlu1 %v451_v7  ;;  %464 = vadd.xlane.f32.xlu0 %v428_v37  ;;  %v1678_v37 = vld [vmem:[#allocation5 + $0x78] ss:$12 sps:$4 sm:$0xff]  }
  0xfc   : > { %v2260_v9 = vsub.f32 %v2122_v11, %v389_v38  ;;  %v308_v43 = vpop.xlane.xlu0 %307 }
  0xfd   : > { %v310_v44 = vpop.xlane.xlu1 %309  ;;  %v366_v48 = vmul.f32 0.0078125, %v308_v43  ;;  %v452_v49 = vmul.f32 %v2257_v41, %v2257_v41  ;;  %924 = vmatpush1.bf16.msra.mxu0 %v1672_v57  ;;  %1590 = vmatpush1.bf16.msra.mxu1 %v1672_v57 }
  0xfe   : > { %v367_v50 = vmul.f32 0.0078125, %v310_v44  ;;  %v453_v51 = vmul.f32 %v2260_v9, %v2260_v9  ;;  %925 = vmatprep.subr.bf16.mxu0 %v1673_v0  ;;  %1583 = vmatprep.subr.bf16.mxu1 %v1673_v0  ;;  %v1679_v44 = vld [vmem:[#allocation5 + $0x94] ss:$12 sps:$4 sm:$0xff]  }
  0xff   : > { %v2267_v10 = vsub.f32 %v2129_v12, %v366_v48  ;;  %466 = vadd.xlane.f32.xlu1 %v429_v42  ;;  %512 = vadd.xlane.f32.xlu0 %v452_v49  ;;  %v1681_v49 = vld [vmem:[#allocation5 + $0x90] ss:$12 sps:$4 sm:$0xff]  }
 0x100   : > { %v2270_v11 = vsub.f32 %v2132_v13, %v367_v50  ;;  %v356_v53 = vpop.xlane.xlu0 %355 }
 0x101   : > { %v358_v56 = vpop.xlane.xlu1 %357  ;;  %v390_v58 = vmul.f32 0.0078125, %v356_v53  ;;  %v430_v59 = vmul.f32 %v2267_v10, %v2267_v10  ;;  %926 = vmatpush1.bf16.msra.mxu0 %v1675_v3  ;;  %1591 = vmatpush1.bf16.msra.mxu1 %v1675_v3 }
 0x102   : > { %v391_v60 = vmul.f32 0.0078125, %v358_v56  ;;  %v431_v61 = vmul.f32 %v2270_v11, %v2270_v11  ;;  %927 = vmatprep.subr.bf16.mxu0 %v1676_v34  ;;  %1584 = vmatprep.subr.bf16.mxu1 %v1676_v34  ;;  %v1682_v56 = vld [vmem:[#allocation5 + $0xac] ss:$12 sps:$4 sm:$0xff]  }
 0x103   : > { %v2277_v12 = vsub.f32 %v2137_v14, %v390_v58  ;;  %514 = vadd.xlane.f32.xlu1 %v453_v51  ;;  %468 = vadd.xlane.f32.xlu0 %v430_v59  ;;  %v1684_v59 = vld [vmem:[#allocation5 + $0xa8] ss:$12 sps:$4 sm:$0xff]  }
 0x104   : > { %v2280_v13 = vsub.f32 %v2140_v15, %v391_v60  ;;  %v312_v1 = vpop.xlane.xlu0 %311 }
 0x105   : > { %v314_v2 = vpop.xlane.xlu1 %313  ;;  %v368_v4 = vmul.f32 0.0078125, %v312_v1  ;;  %v454_v5 = vmul.f32 %v2277_v12, %v2277_v12  ;;  %928 = vmatpush1.bf16.msra.mxu0 %v1678_v37  ;;  %1592 = vmatpush1.bf16.msra.mxu1 %v1678_v37 }
 0x106   : > { %v369_v7 = vmul.f32 0.0078125, %v314_v2  ;;  %v455_v33 = vmul.f32 %v2280_v13, %v2280_v13  ;;  %929 = vmatprep.subr.bf16.mxu0 %v1679_v44  ;;  %1585 = vmatprep.subr.bf16.mxu1 %v1679_v44 }
 0x107   : > { %v2287_v14 = vsub.f32 %v2145_v16, %v368_v4  ;;  %470 = vadd.xlane.f32.xlu1 %v431_v61  ;;  %516 = vadd.xlane.f32.xlu0 %v454_v5  ;;  %v1893_v4 = vmov 0  }
 0x108   : > { %v2290_v15 = vsub.f32 %v2148_v17, %v369_v7  ;;  %v316_v35 = vpop.xlane.xlu0 %315  ;;  %949 = vmatprep.mubr.bf16.mxu0 %v1893_v4  ;;  %1069 = vmatprep.mubr.bf16.mxu1 %v1893_v4 }
 0x109   : > { %v318_v36 = vpop.xlane.xlu1 %317  ;;  %v370_v38 = vmul.f32 0.0078125, %v316_v35  ;;  %v432_v8 = vmul.f32 %v2287_v14, %v2287_v14  ;;  %930 = vmatpush1.bf16.msra.mxu0 %v1681_v49  ;;  %1593 = vmatpush1.bf16.msra.mxu1 %v1681_v49  ;;  %v2336_v35 = vld [vmem:[#allocation5 + $0x8] ss:$12 sps:$4 sm:$0xff]  }
 0x10a   : > { %v371_v42 = vmul.f32 0.0078125, %v318_v36  ;;  %v433_v43 = vmul.f32 %v2290_v15, %v2290_v15  ;;  %931 = vmatprep.subr.bf16.mxu0 %v1682_v56  ;;  %1586 = vmatprep.subr.bf16.mxu1 %v1682_v56 }
 0x10b   : > { %v2297_v16 = vsub.f32 %v2153_v18, %v370_v38  ;;  %518 = vadd.xlane.f32.xlu1 %v455_v33  ;;  %472 = vadd.xlane.f32.xlu0 %v432_v8 }
 0x10c   : > { %v2300_v17 = vsub.f32 %v2156_v19, %v371_v42  ;;  %v320_v45 = vpop.xlane.xlu0 %319 }
 0x10d   : > { %v322_v48 = vpop.xlane.xlu1 %321  ;;  %v372_v50 = vmul.f32 0.0078125, %v320_v45  ;;  %v434_v51 = vmul.f32 %v2297_v16, %v2297_v16  ;;  %932 = vmatpush1.bf16.msra.mxu0 %v1684_v59  ;;  %1594 = vmatpush1.bf16.msra.mxu1 %v1684_v59 }
 0x10e   : > { %v373_v52 = vmul.f32 0.0078125, %v322_v48  ;;  %v435_v53 = vmul.f32 %v2300_v17, %v2300_v17  ;;  %1531 = vmatprep.subr.bf16.mxu1 %v2336_v35 }
 0x10f   : > { %v2307_v18 = vsub.f32 %v2161_v20, %v372_v50  ;;  %474 = vadd.xlane.f32.xlu1 %v433_v43  ;;  %476 = vadd.xlane.f32.xlu0 %v434_v51 }
 0x110   : > { %v2310_v19 = vsub.f32 %v2164_v21, %v373_v52  ;;  %v324_v57 = vpop.xlane.xlu0 %323 }
 0x111   : > { %v326_v58 = vpop.xlane.xlu1 %325  ;;  %v374_v60 = vmul.f32 0.0078125, %v324_v57  ;;  %v436_v61 = vmul.f32 %v2307_v18, %v2307_v18 }
 0x112   : > { %v375_v0 = vmul.f32 0.0078125, %v326_v58  ;;  %v437_v1 = vmul.f32 %v2310_v19, %v2310_v19 }
 0x113   : > { %v2317_v20 = vsub.f32 %v2169_v22, %v374_v60  ;;  %478 = vadd.xlane.f32.xlu1 %v435_v53  ;;  %480 = vadd.xlane.f32.xlu0 %v436_v61 }
 0x114   : > { %v2320_v21 = vsub.f32 %v2172_v23, %v375_v0  ;;  %v328_v2 = vpop.xlane.xlu0 %327 }
 0x115   : > { %v330_v3 = vpop.xlane.xlu1 %329  ;;  %v376_v5 = vmul.f32 0.0078125, %v328_v2  ;;  %v438_v22 = vmul.f32 %v2317_v20, %v2317_v20 }
 0x116   : > { %v377_v7 = vmul.f32 0.0078125, %v330_v3  ;;  %v439_v34 = vmul.f32 %v2320_v21, %v2320_v21 }
 0x117   : > { %v2329_v33 = vsub.f32 %v2177_v24, %v376_v5  ;;  %482 = vadd.xlane.f32.xlu1 %v437_v1  ;;  %484 = vadd.xlane.f32.xlu0 %v438_v22 }
 0x118   : > { %v2332_v23 = vsub.f32 %v2180_v25, %v377_v7  ;;  %v332_v36 = vpop.xlane.xlu0 %331 }
 0x119   : > { %v334_v37 = vpop.xlane.xlu1 %333  ;;  %v378_v38 = vmul.f32 0.0078125, %v332_v36  ;;  %v440_v8 = vmul.f32 %v2329_v33, %v2329_v33 }
 0x11a   : > { %v379_v42 = vmul.f32 0.0078125, %v334_v37  ;;  %v441_v43 = vmul.f32 %v2332_v23, %v2332_v23 }
 0x11b   : > { %v2342_v24 = vsub.f32 %v2185_v26, %v378_v38  ;;  %486 = vadd.xlane.f32.xlu1 %v439_v34  ;;  %488 = vadd.xlane.f32.xlu0 %v440_v8 }
 0x11c   : > { %v2345_v25 = vsub.f32 %v2188_v27, %v379_v42  ;;  %v336_v44 = vpop.xlane.xlu0 %335 }
 0x11d   : > { %v338_v45 = vpop.xlane.xlu1 %337  ;;  %v380_v48 = vmul.f32 0.0078125, %v336_v44  ;;  %v442_v49 = vmul.f32 %v2342_v24, %v2342_v24 }
 0x11e   : > { %v381_v50 = vmul.f32 0.0078125, %v338_v45  ;;  %v443_v27 = vmul.f32 %v2345_v25, %v2345_v25 }
 0x11f   : > { %v2352_v51 = vsub.f32 %v2193_v28, %v380_v48  ;;  %490 = vadd.xlane.f32.xlu1 %v441_v43  ;;  %492 = vadd.xlane.f32.xlu0 %v442_v49 }
 0x120   : > { %v2355_v26 = vsub.f32 %v2196_v29, %v381_v50  ;;  %v340_v52 = vpop.xlane.xlu0 %339 }
 0x121   : > { %v342_v53 = vpop.xlane.xlu1 %341  ;;  %v382_v56 = vmul.f32 0.0078125, %v340_v52  ;;  %v444_v57 = vmul.f32 %v2352_v51, %v2352_v51 }
 0x122   : > { %v383_v58 = vmul.f32 0.0078125, %v342_v53  ;;  %v445_v29 = vmul.f32 %v2355_v26, %v2355_v26 }
 0x123   : > { %v2362_v59 = vsub.f32 %v2201_v30, %v382_v56  ;;  %494 = vadd.xlane.f32.xlu1 %v443_v27  ;;  %496 = vadd.xlane.f32.xlu0 %v444_v57 }
 0x124   : > { %v2365_v28 = vsub.f32 %v2204_v31, %v383_v58 }
 0x125   : > { %v446_v60 = vmul.f32 %v2362_v59, %v2362_v59 }
 0x126   : > { %v447_v61 = vmul.f32 %v2365_v28, %v2365_v28 }
 0x127   : > { %498 = vadd.xlane.f32.xlu1 %v445_v29  ;;  %500 = vadd.xlane.f32.xlu0 %v446_v60  ;;  %v2377_v29 = vld [vmem:[%s2792_s1] ss:$0 sm:$0xff] }
 0x12b   : > { %502 = vadd.xlane.f32.xlu1 %v447_v61 }
 0x178   : > { %v457_v0 = vpop.xlane.xlu0 %456 }
 0x179   : > { %v520_v30 = vmul.f32 0.0078125, %v457_v0 }
 0x17b   : > { %v552_v1 = vadd.f32 1e-05, %v520_v30 }
 0x17c   : > { %v459_v2 = vpop.xlane.xlu1 %458  ;;  %v505_v3 = vpop.xlane.xlu0 %504 }
 0x17d   : > { %1693 = vrsqrt.f32 %v552_v1  ;;  %v521_v31 = vmul.f32 0.0078125, %v459_v2  ;;  %v544_v5 = vmul.f32 0.0078125, %v505_v3 }
 0x17f   : > { %v553_v22 = vadd.f32 1e-05, %v521_v31  ;;  %v576_v7 = vadd.f32 1e-05, %v544_v5 }
 0x180   : > { %v507_v34 = vpop.xlane.xlu1 %506  ;;  %v461_v36 = vpop.xlane.xlu0 %460 }
 0x181   : > { %1695 = vrsqrt.f32 %v553_v22  ;;  %v545_v37 = vmul.f32 0.0078125, %v507_v34  ;;  %v522_v38 = vmul.f32 0.0078125, %v461_v36  ;;  %v2384_v22 = vld [vmem:[%s2793_s2] ss:$0 sm:$0xff] }
 0x182   : > { %1697 = vrsqrt.f32 %v576_v7 }
 0x183   : > { %v577_v8 = vadd.f32 1e-05, %v545_v37  ;;  %v554_v42 = vadd.f32 1e-05, %v522_v38 }
 0x184   : > { %v463_v43 = vpop.xlane.xlu1 %462  ;;  %v509_v44 = vpop.xlane.xlu0 %508 }
 0x185   : > { %1699 = vrsqrt.f32 %v577_v8  ;;  %v523_v45 = vmul.f32 0.0078125, %v463_v43  ;;  %v546_v48 = vmul.f32 0.0078125, %v509_v44 }
 0x186   : > { %1701 = vrsqrt.f32 %v554_v42 }
 0x187   : > { %v1694_v49 = vpop.eup %1693  ;;  %v555_v50 = vadd.f32 1e-05, %v523_v45  ;;  %v578_v27 = vadd.f32 1e-05, %v546_v48 }
 0x188   : > { %v511_v52 = vpop.xlane.xlu1 %510  ;;  %v465_v53 = vpop.xlane.xlu0 %464  ;;  %v616_v56 = vmul.f32 %v1694_v49, %v2209_v39 }
 0x189   : > { %1703 = vrsqrt.f32 %v555_v50  ;;  %v547_v57 = vmul.f32 0.0078125, %v511_v52  ;;  %v524_v58 = vmul.f32 0.0078125, %v465_v53 }
 0x18a   : > { %1705 = vrsqrt.f32 %v578_v27  ;;  %v654_v31 = vmul.f32 %v2377_v29, %v616_v56 }
 0x18b   : > { %v1696_v60 = vpop.eup %1695  ;;  %v579_v61 = vadd.f32 1e-05, %v547_v57  ;;  %v556_v0 = vadd.f32 1e-05, %v524_v58 }
 0x18c   : > { %v1698_v30 = vpop.eup %1697  ;;  %v467_v1 = vpop.xlane.xlu1 %466  ;;  %v617_v3 = vmul.f32 %v1696_v60, %v2217_v46  ;;  %v692_v43 = vadd.f32 %v2384_v22, %v654_v31 }
 0x18d   : > { %v513_v2 = vpop.xlane.xlu0 %512  ;;  %1707 = vrsqrt.f32 %v579_v61  ;;  %v525_v39 = vmul.f32 0.0078125, %v467_v1  ;;  %v640_v7 = vmul.f32 %v1698_v30, %v2212_v40 }
 0x18e   : > { %v548_v5 = vmul.f32 0.0078125, %v513_v2  ;;  %1709 = vrsqrt.f32 %v556_v0  ;;  %v655_v34 = vmul.f32 %v2377_v29, %v617_v3 }
 0x18f   : > { %v1700_v36 = vpop.eup %1699  ;;  %v557_v37 = vadd.f32 1e-05, %v525_v39  ;;  %v678_v48 = vmul.f32 %v2377_v29, %v640_v7  ;;  %v1686_v39 = vld [vmem:[#allocation5 + $0x20] ss:$12 sps:$4 sm:$0xff]  }
 0x190   : > { %v580_v38 = vadd.f32 1e-05, %v548_v5  ;;  %v1702_v8 = vpop.eup %1701  ;;  %v515_v46 = vpop.xlane.xlu1 %514  ;;  %v693_v44 = vadd.f32 %v2384_v22, %v655_v34  ;;  %v641_v45 = vmul.f32 %v1700_v36, %v2220_v47 }
 0x191   : > { %v469_v42 = vpop.xlane.xlu0 %468  ;;  %1711 = vrsqrt.f32 %v557_v37  ;;  %v549_v49 = vmul.f32 0.0078125, %v515_v46  ;;  %v618_v52 = vmul.f32 %v1702_v8, %v2227_v54  ;;  %v716_v61 = vadd.f32 %v2384_v22, %v678_v48  ;;  %v1687_v48 = vld [vmem:[#allocation5 + $0x38] ss:$12 sps:$4 sm:$0xff]  }
 0x192   : > { %v526_v40 = vmul.f32 0.0078125, %v469_v42  ;;  %1713 = vrsqrt.f32 %v580_v38  ;;  %v2392_v50 = vpack.c.bf16 %v693_v44, %v692_v43  ;;  %v679_v27 = vmul.f32 %v2377_v29, %v641_v45 }
 0x193   : > { %v1704_v53 = vpop.eup %1703  ;;  %v581_v56 = vadd.f32 1e-05, %v549_v49  ;;  %v656_v1 = vmul.f32 %v2377_v29, %v618_v52 }
 0x194   : > { %v558_v57 = vadd.f32 1e-05, %v526_v40  ;;  %v1706_v58 = vpop.eup %1705  ;;  %v471_v60 = vpop.xlane.xlu1 %470  ;;  %950 = vmatmul.mubr.bf16.vlgmr.msra.gmra.mrb[0].mxu0 %v2392_v50  ;;  %v717_v0 = vadd.f32 %v2384_v22, %v679_v27  ;;  %v619_v30 = vmul.f32 %v1704_v53, %v2230_v55 }
 0x195   : > { %v517_v47 = vpop.xlane.xlu0 %516  ;;  %1715 = vrsqrt.f32 %v581_v56  ;;  %v527_v2 = vmul.f32 0.0078125, %v471_v60  ;;  %959 = vmatprep.mubr.bf16.mxu0 %v1893_v4  ;;  %v642_v54 = vmul.f32 %v1706_v58, %v2237_v62  ;;  %v694_v8 = vadd.f32 %v2384_v22, %v656_v1  ;;  %v1688_v1 = vld [vmem:[#allocation5 + $0x50] ss:$12 sps:$4 sm:$0xff]  }
 0x196   : > { %v550_v3 = vmul.f32 0.0078125, %v517_v47  ;;  %1717 = vrsqrt.f32 %v558_v57  ;;  %v2403_v31 = vpack.c.bf16 %v717_v0, %v716_v61  ;;  %v657_v5 = vmul.f32 %v2377_v29, %v619_v30 }
 0x197   : > { %v1708_v7 = vpop.eup %1707  ;;  %v559_v34 = vadd.f32 1e-05, %v527_v2  ;;  %v680_v42 = vmul.f32 %v2377_v29, %v642_v54 }
 0x198   : > { %v582_v36 = vadd.f32 1e-05, %v550_v3  ;;  %v1710_v37 = vpop.eup %1709  ;;  %v519_v55 = vpop.xlane.xlu1 %518  ;;  %1070 = vmatmul.mubr.bf16.vlgmr.msra.gmra.mrb[0].mxu1 %v2403_v31  ;;  %v695_v46 = vadd.f32 %v2384_v22, %v657_v5  ;;  %v643_v62 = vmul.f32 %v1708_v7, %v2240_v63 }
 0x199   : > { %v473_v38 = vpop.xlane.xlu0 %472  ;;  %1719 = vrsqrt.f32 %v559_v34  ;;  %v551_v43 = vmul.f32 0.0078125, %v519_v55  ;;  %1532 = vmatpush3.bf16.msra.mxu1 %v2336_v35  ;;  %1079 = vmatprep.mubr.bf16.mxu1 %v1893_v4  ;;  %v620_v40 = vmul.f32 %v1710_v37, %v2247_v32  ;;  %v718_v57 = vadd.f32 %v2384_v22, %v680_v42 }
 0x19a   : > { %v528_v44 = vmul.f32 0.0078125, %v473_v38  ;;  %1721 = vrsqrt.f32 %v582_v36  ;;  %1533 = vmatprep.subr.bf16.mxu1 %v1686_v39  ;;  %v2413_v45 = vpack.c.bf16 %v695_v46, %v694_v8  ;;  %v681_v49 = vmul.f32 %v2377_v29, %v643_v62  ;;  %v1689_v8 = vld [vmem:[#allocation5 + $0x68] ss:$12 sps:$4 sm:$0xff]  }
 0x19b   : > { %v1712_v27 = vpop.eup %1711  ;;  %v583_v63 = vadd.f32 1e-05, %v551_v43  ;;  %v658_v47 = vmul.f32 %v2377_v29, %v620_v40 }
 0x19c   : > { %v560_v52 = vadd.f32 1e-05, %v528_v44  ;;  %v1714_v53 = vpop.eup %1713  ;;  %v475_v56 = vpop.xlane.xlu1 %474  ;;  %960 = vmatmul.mubr.bf16.gmra.mrb[4].mxu0 %v2413_v45  ;;  %v719_v58 = vadd.f32 %v2384_v22, %v681_v49  ;;  %v621_v60 = vmul.f32 %v1712_v27, %v2250_v6 }
 0x19d   : > { %v477_v35 = vpop.xlane.xlu0 %476  ;;  %1723 = vrsqrt.f32 %v583_v63  ;;  %v529_v61 = vmul.f32 0.0078125, %v475_v56  ;;  %1534 = vmatpush3.bf16.msra.mxu1 %v1686_v39  ;;  %969 = vmatprep.mubr.bf16.mxu0 %v1893_v4  ;;  %v644_v0 = vmul.f32 %v1714_v53, %v2257_v41  ;;  %v696_v34 = vadd.f32 %v2384_v22, %v658_v47 }
 0x19e   : > { %v530_v32 = vmul.f32 0.0078125, %v477_v35  ;;  %1725 = vrsqrt.f32 %v560_v52  ;;  %1535 = vmatprep.subr.bf16.mxu1 %v1687_v48  ;;  %v2424_v30 = vpack.c.bf16 %v719_v58, %v718_v57  ;;  %v659_v2 = vmul.f32 %v2377_v29, %v621_v60  ;;  %v1690_v35 = vld [vmem:[#allocation5 + $0x80] ss:$12 sps:$4 sm:$0xff]  }
 0x19f   : > { %v1716_v3 = vpop.eup %1715  ;;  %v561_v54 = vadd.f32 1e-05, %v529_v61  ;;  %v682_v37 = vmul.f32 %v2377_v29, %v644_v0 }
 0x1a0   : > { %v562_v6 = vadd.f32 1e-05, %v530_v32  ;;  %v1718_v5 = vpop.eup %1717  ;;  %v479_v7 = vpop.xlane.xlu1 %478  ;;  %1080 = vmatmul.mubr.bf16.gmra.mrb[4].mxu1 %v2424_v30  ;;  %v697_v36 = vadd.f32 %v2384_v22, %v659_v2  ;;  %v645_v41 = vmul.f32 %v1716_v3, %v2260_v9 }
 0x1a1   : > { %v481_v39 = vpop.xlane.xlu0 %480  ;;  %1727 = vrsqrt.f32 %v561_v54  ;;  %v531_v55 = vmul.f32 0.0078125, %v479_v7  ;;  %1536 = vmatpush3.bf16.msra.mxu1 %v1687_v48  ;;  %1089 = vmatprep.mubr.bf16.mxu1 %v1893_v4  ;;  %v622_v62 = vmul.f32 %v1718_v5, %v2267_v10  ;;  %v720_v48 = vadd.f32 %v2384_v22, %v682_v37 }
 0x1a2   : > { %1729 = vrsqrt.f32 %v562_v6  ;;  %1537 = vmatprep.subr.bf16.mxu1 %v1688_v1  ;;  %v2433_v38 = vpack.c.bf16 %v697_v36, %v696_v34  ;;  %v683_v46 = vmul.f32 %v2377_v29, %v645_v41  ;;  %v532_v44 = vmul.f32 0.0078125, %v481_v39  ;;  %v1691_v6 = vld [vmem:[#allocation5 + $0x98] ss:$12 sps:$4 sm:$0xff]  }
 0x1a3   : > { %v1720_v42 = vpop.eup %1719  ;;  %v563_v43 = vadd.f32 1e-05, %v531_v55  ;;  %v660_v52 = vmul.f32 %v2377_v29, %v622_v62 }
 0x1a4   : > { %v1722_v9 = vpop.eup %1721  ;;  %v483_v49 = vpop.xlane.xlu1 %482  ;;  %970 = vmatmul.mubr.bf16.gmra.mrb[8].mxu0 %v2433_v38  ;;  %v721_v27 = vadd.f32 %v2384_v22, %v683_v46  ;;  %v623_v63 = vmul.f32 %v1720_v42, %v2270_v11  ;;  %v564_v60 = vadd.f32 1e-05, %v532_v44  ;;  %v1692_v44 = vld [vmem:[#allocation5 + $0xb0] ss:$12 sps:$4 sm:$0xff]  }
 0x1a5   : > { %v485_v40 = vpop.xlane.xlu0 %484  ;;  %1731 = vrsqrt.f32 %v563_v43  ;;  %v533_v53 = vmul.f32 0.0078125, %v483_v49  ;;  %1538 = vmatpush3.bf16.msra.mxu1 %v1688_v1  ;;  %979 = vmatprep.mubr.bf16.mxu0 %v1893_v4  ;;  %v646_v10 = vmul.f32 %v1722_v9, %v2277_v12  ;;  %v698_v0 = vadd.f32 %v2384_v22, %v660_v52 }
 0x1a6   : > { %1539 = vmatprep.subr.bf16.mxu1 %v1689_v8  ;;  %v2444_v56 = vpack.c.bf16 %v721_v27, %v720_v48  ;;  %v661_v57 = vmul.f32 %v2377_v29, %v623_v63  ;;  %v534_v34 = vmul.f32 0.0078125, %v485_v40 }
 0x1a7   : > { %v1724_v58 = vpop.eup %1723  ;;  %v565_v47 = vadd.f32 1e-05, %v533_v53  ;;  %v684_v2 = vmul.f32 %v2377_v29, %v646_v10 }
 0x1a8   : > { %v1726_v61 = vpop.eup %1725  ;;  %v487_v11 = vpop.xlane.xlu1 %486  ;;  %1090 = vmatmul.mubr.bf16.gmra.mrb[8].mxu1 %v2444_v56  ;;  %v699_v1 = vadd.f32 %v2384_v22, %v661_v57  ;;  %v647_v12 = vmul.f32 %v1724_v58, %v2280_v13  ;;  %v566_v40 = vadd.f32 1e-05, %v534_v34 }
 0x1a9   : > { %v489_v32 = vpop.xlane.xlu0 %488  ;;  %1733 = vrsqrt.f32 %v565_v47  ;;  %v535_v3 = vmul.f32 0.0078125, %v487_v11  ;;  %1540 = vmatpush3.bf16.msra.mxu1 %v1689_v8  ;;  %1099 = vmatprep.mubr.bf16.mxu1 %v1893_v4  ;;  %v624_v7 = vmul.f32 %v1726_v61, %v2287_v14  ;;  %v722_v37 = vadd.f32 %v2384_v22, %v684_v2 }
 0x1aa   : > { %1541 = vmatprep.subr.bf16.mxu1 %v1690_v35  ;;  %v2453_v54 = vpack.c.bf16 %v699_v1, %v698_v0  ;;  %v685_v5 = vmul.f32 %v2377_v29, %v647_v12  ;;  %1735 = vrsqrt.f32 %v564_v60  ;;  %v536_v48 = vmul.f32 0.0078125, %v489_v32 }
 0x1ab   : > { %v1728_v39 = vpop.eup %1727  ;;  %v662_v46 = vmul.f32 %v2377_v29, %v624_v7  ;;  %v567_v62 = vadd.f32 1e-05, %v535_v3 }
 0x1ac   : > { %v1730_v36 = vpop.eup %1729  ;;  %v491_v13 = vpop.xlane.xlu1 %490  ;;  %980 = vmatmul.mubr.bf16.gmra.mrb[12].mxu0 %v2453_v54  ;;  %v723_v55 = vadd.f32 %v2384_v22, %v685_v5  ;;  %v625_v8 = vmul.f32 %v1728_v39, %v2290_v15  ;;  %v568_v0 = vadd.f32 1e-05, %v536_v48 }
 0x1ad   : > { %v493_v41 = vpop.xlane.xlu0 %492  ;;  %v537_v42 = vmul.f32 0.0078125, %v491_v13  ;;  %1542 = vmatpush3.bf16.msra.mxu1 %v1690_v35  ;;  %989 = vmatprep.mubr.bf16.mxu0 %v1893_v4  ;;  %v626_v15 = vmul.f32 %v1730_v36, %v2297_v16  ;;  %v700_v10 = vadd.f32 %v2384_v22, %v662_v46  ;;  %1737 = vrsqrt.f32 %v567_v62 }
 0x1ae   : > { %v538_v14 = vmul.f32 0.0078125, %v493_v41  ;;  %1543 = vmatprep.subr.bf16.mxu1 %v1691_v6  ;;  %v2463_v43 = vpack.c.bf16 %v723_v55, %v722_v37  ;;  %v663_v9 = vmul.f32 %v2377_v29, %v625_v8 }
 0x1af   : > { %v1732_v49 = vpop.eup %1731  ;;  %v569_v63 = vadd.f32 1e-05, %v537_v42  ;;  %v664_v12 = vmul.f32 %v2377_v29, %v626_v15 }
 0x1b0   : > { %v570_v27 = vadd.f32 1e-05, %v538_v14  ;;  %v495_v52 = vpop.xlane.xlu1 %494  ;;  %1100 = vmatmul.mubr.bf16.gmra.mrb[12].mxu1 %v2463_v43  ;;  %v701_v35 = vadd.f32 %v2384_v22, %v663_v9  ;;  %v627_v57 = vmul.f32 %v1732_v49, %v2300_v17 }
 0x1b1   : > { %v497_v53 = vpop.xlane.xlu0 %496  ;;  %v539_v58 = vmul.f32 0.0078125, %v495_v52  ;;  %1544 = vmatpush3.bf16.msra.mxu1 %v1691_v6  ;;  %1547 = vmatprep.mubr.bf16.mxu1 %v2392_v50  ;;  %v702_v36 = vadd.f32 %v2384_v22, %v664_v12 }
 0x1b2   : > { %v540_v60 = vmul.f32 0.0078125, %v497_v53  ;;  %1739 = vrsqrt.f32 %v570_v27  ;;  %1545 = vmatprep.subr.bf16.mxu1 %v1692_v44  ;;  %v728_v16 = vpack.c.bf16 %v701_v35, %v700_v10  ;;  %v665_v47 = vmul.f32 %v2377_v29, %v627_v57 }
 0x1b3   : > { %v1734_v61 = vpop.eup %1733  ;;  %1741 = vrsqrt.f32 %v566_v40  ;;  %v571_v11 = vadd.f32 1e-05, %v539_v58 }
 0x1b4   : > { %v572_v32 = vadd.f32 1e-05, %v540_v60  ;;  %1743 = vrsqrt.f32 %v569_v63  ;;  %v499_v1 = vpop.xlane.xlu1 %498  ;;  %990 = vmatmul.mubr.bf16.gmra.mrb[16].mxu0 %v728_v16  ;;  %v1736_v2 = vpop.eup %1735  ;;  %v703_v6 = vadd.f32 %v2384_v22, %v665_v47  ;;  %v629_v5 = vmul.f32 %v1734_v61, %v2310_v19 }
 0x1b5   : > { %v501_v17 = vpop.xlane.xlu0 %500  ;;  %1745 = vrsqrt.f32 %v571_v11  ;;  %v541_v3 = vmul.f32 0.0078125, %v499_v1  ;;  %1546 = vmatpush3.bf16.msra.mxu1 %v1692_v44  ;;  %999 = vmatprep.mubr.bf16.mxu0 %v1893_v4  ;;  %v628_v13 = vmul.f32 %v1736_v2, %v2307_v18 }
 0x1b6   : > { %v542_v50 = vmul.f32 0.0078125, %v501_v17  ;;  %1747 = vrsqrt.f32 %v572_v32  ;;  %v729_v37 = vpack.c.bf16 %v703_v6, %v702_v36  ;;  %v667_v55 = vmul.f32 %v2377_v29, %v629_v5 }
 0x1b7   : > { %v573_v7 = vadd.f32 1e-05, %v541_v3  ;;  %1749 = vrsqrt.f32 %v568_v0  ;;  %v1738_v8 = vpop.eup %1737  ;;  %v666_v62 = vmul.f32 %v2377_v29, %v628_v13 }
 0x1b8   : > { %v574_v39 = vadd.f32 1e-05, %v542_v50  ;;  %v503_v34 = vpop.xlane.xlu1 %502  ;;  %1548 = vmatmul.mubr.bf16.vlgmr.msra.gmra.mrb[16].mxu1 %v2413_v45  ;;  %v705_v14 = vadd.f32 %v2384_v22, %v667_v55 }
 0x1b9   : > { %1751 = vrsqrt.f32 %v573_v7  ;;  %v543_v41 = vmul.f32 0.0078125, %v503_v34  ;;  %1551 = vmatprep.mubr.bf16.mxu1 %v2433_v38  ;;  %v631_v38 = vmul.f32 %v1738_v8, %v2320_v21  ;;  %v704_v40 = vadd.f32 %v2384_v22, %v666_v62  ;;  %v2532_v34 = vld [vmem:[%s2795_s4] sm:$0x7] }
 0x1ba   : > { %1753 = vrsqrt.f32 %v574_v39 }
 0x1bb   : > { %v575_v19 = vadd.f32 1e-05, %v543_v41  ;;  %v730_v52 = vpack.c.bf16 %v705_v14, %v704_v40  ;;  %v669_v21 = vmul.f32 %v2377_v29, %v631_v38 }
 0x1bc   : > { %v1740_v46 = vpop.eup %1739  ;;  %1000 = vmatmul.mubr.bf16.gmra.mrb[20].mxu0 %v729_v37 }
 0x1bd   : > { %v1742_v42 = vpop.eup %1741  ;;  %1755 = vrsqrt.f32 %v575_v19  ;;  %1009 = vmatprep.mubr.bf16.mxu0 %v1893_v4  ;;  %v634_v18 = vmul.f32 %v1740_v46, %v2342_v24 }
 0x1be   : > { %v1744_v45 = vpop.eup %1743  ;;  %v630_v48 = vmul.f32 %v1742_v42, %v2317_v20 }
 0x1bf   : > { %v1746_v44 = vpop.eup %1745  ;;  %v672_v9 = vmul.f32 %v2377_v29, %v634_v18 }
 0x1c0   : > { %v1748_v49 = vpop.eup %1747  ;;  %1552 = vmatmul.mubr.bf16.gmra.mrb[20].mxu1 %v2453_v54  ;;  %v635_v27 = vmul.f32 %v1746_v44, %v2345_v25  ;;  %v633_v54 = vmul.f32 %v1744_v45, %v2332_v23  ;;  %v668_v20 = vmul.f32 %v2377_v29, %v630_v48  ;;  %v707_v23 = vadd.f32 %v2384_v22, %v669_v21 }
 0x1c1   : > { %1555 = vmatprep.mubr.bf16.mxu1 %v728_v16  ;;  %v710_v24 = vadd.f32 %v2384_v22, %v672_v9  ;;  %v636_v15 = vmul.f32 %v1748_v49, %v2352_v51  ;;  %v1750_v63 = vpop.eup %1749 }
 0x1c2   : > { %v673_v53 = vmul.f32 %v2377_v29, %v635_v27  ;;  %v632_v51 = vmul.f32 %v1750_v63, %v2329_v33  ;;  %v671_v32 = vmul.f32 %v2377_v29, %v633_v54 }
 0x1c3   : > { %v1752_v10 = vpop.eup %1751  ;;  %v674_v35 = vmul.f32 %v2377_v29, %v636_v15 }
 0x1c4   : > { %v1754_v57 = vpop.eup %1753  ;;  %1010 = vmatmul.mubr.bf16.gmra.mrb[24].mxu0 %v730_v52  ;;  %v711_v25 = vadd.f32 %v2384_v22, %v673_v53  ;;  %v637_v58 = vmul.f32 %v1752_v10, %v2355_v26  ;;  %v706_v26 = vadd.f32 %v2384_v22, %v668_v20  ;;  %v709_v50 = vadd.f32 %v2384_v22, %v671_v32 }
 0x1c5   : > { %1019 = vmatprep.mubr.bf16.mxu0 %v1893_v4  ;;  %v712_v60 = vadd.f32 %v2384_v22, %v674_v35  ;;  %v638_v16 = vmul.f32 %v1754_v57, %v2362_v59  ;;  %v670_v59 = vmul.f32 %v2377_v29, %v632_v51 }
 0x1c6   : > { %v733_v47 = vpack.c.bf16 %v711_v25, %v710_v24  ;;  %v675_v61 = vmul.f32 %v2377_v29, %v637_v58  ;;  %v731_v12 = vpack.c.bf16 %v707_v23, %v706_v26 }
 0x1c7   : > { %v1756_v11 = vpop.eup %1755  ;;  %v676_v0 = vmul.f32 %v2377_v29, %v638_v16  ;;  %v708_v5 = vadd.f32 %v2384_v22, %v670_v59 }
 0x1c8   : > { %1556 = vmatmul.mubr.bf16.gmra.mrb[24].mxu1 %v729_v37  ;;  %v713_v1 = vadd.f32 %v2384_v22, %v675_v61  ;;  %v639_v33 = vmul.f32 %v1756_v11, %v2365_v28 }
 0x1c9   : > { %1559 = vmatprep.mubr.bf16.mxu1 %v730_v52  ;;  %v714_v17 = vadd.f32 %v2384_v22, %v676_v0  ;;  %v732_v28 = vpack.c.bf16 %v709_v50, %v708_v5 }
 0x1ca   : > { %v734_v2 = vpack.c.bf16 %v713_v1, %v712_v60  ;;  %v677_v3 = vmul.f32 %v2377_v29, %v639_v33  ;;  %v774_v29 = vlaneseq }
 0x1cc   : > { %1020 = vmatmul.mubr.bf16.gmra.mrb[28].mxu0 %v731_v12  ;;  %v715_v6 = vadd.f32 %v2384_v22, %v677_v3  ;;  %v2526_v22 = vshrl.u32 %v774_v29, 7 }
 0x1cd   : > { %1029 = vmatprep.mubr.bf16.mxu0 %v1893_v4 }
 0x1ce   : > { %v735_v7 = vpack.c.bf16 %v715_v6, %v714_v17  ;;  %v776_v39 = vsub.s32 0, %v2526_v22 }
 0x1d0   : > { %1560 = vmatmul.mubr.bf16.gmra.mrb[28].mxu1 %v731_v12 }
 0x1d1   : > { %1563 = vmatprep.mubr.bf16.mxu1 %v732_v28 }
 0x1d4   : > { %1030 = vmatmul.mubr.bf16.gmra.mrb[32].mxu0 %v732_v28 }
 0x1d5   : > { %1039 = vmatprep.mubr.bf16.mxu0 %v1893_v4 }
 0x1d8   : > { %1564 = vmatmul.mubr.bf16.gmra.mrb[32].mxu1 %v733_v47 }
 0x1d9   : > { %1567 = vmatprep.mubr.bf16.mxu1 %v734_v2 }
 0x1dc   : > { %1040 = vmatmul.mubr.bf16.gmra.mrb[36].mxu0 %v733_v47 }
 0x1dd   : > { %1049 = vmatprep.mubr.bf16.mxu0 %v1893_v4 }
 0x1e0   : > { %1568 = vmatmul.mubr.bf16.gmra.mrb[36].mxu1 %v735_v7 }
 0x1e1   : > { %1571 = vmatprep.mubr.bf16.mxu1 %v2403_v31  ;;  %v780_v31 = vsub.s32 1, %v2526_v22 }
 0x1e4   : > { %1050 = vmatmul.mubr.bf16.gmra.mrb[40].mxu0 %v734_v2 }
 0x1e5   : > { %1059 = vmatprep.mubr.bf16.mxu0 %v1893_v4  ;;  %v2537_v4 = vrot.slane %v2532_v34, %v776_v39 }
 0x1e8   : > { %1572 = vmatmul.mubr.bf16.gmra.mrb[40].mxu1 %v2424_v30  ;;  %v2540_v30 = vrot.slane %v2532_v34, %v780_v31  ;;  %v784_v31 = vsub.s32 2, %v2526_v22 }
 0x1e9   : > { %1575 = vmatprep.mubr.bf16.mxu1 %v2444_v56 }
 0x1ec   : > { %1060 = vmatmul.mubr.bf16.gmra.mrb[44].mxu0 %v735_v7 }
 0x1f0   : > { %1576 = vmatmul.mubr.bf16.gmra.mrb[44].mxu1 %v2463_v43 }
 0x267   : > { %v951_v56 = vpop.f32.mrb[0].mxu0 }
 0x268   : > { %v952_v43 = vadd.f32 %v951_v56, %v2537_v4  ;;  %v953_v36 = vpop.f32.mrb[1].mxu0 }
 0x269   : > { %v954_v13 = vadd.f32 %v953_v36, %v2540_v30  ;;  %v955_v41 = vpop.f32.mrb[2].mxu0 }
 0x26a   : > { %1271 = vst [vmem:[%s2544_s29] sm:$0xff] %v952_v43  ;;  %v956_v37 = vadd.f32 %v955_v41, %v2537_v4  ;;  %v957_v55 = vpop.f32.mrb[3].mxu0 }
 0x26b   : > { %1272 = vst [vmem:[%s2544_s29 + $0x8] sm:$0xff] %v954_v13  ;;  %v958_v8 = vadd.f32 %v957_v55, %v2540_v30  ;;  %v1071_v19 = vpop.f32.mrb[0].mxu1 }
 0x26c   : > { %1274 = vst [vmem:[%s2544_s29 + $0x18] sm:$0xff] %v956_v37  ;;  %v1072_v46 = vadd.f32 %v1071_v19, %v2537_v4  ;;  %v1073_v62 = vpop.f32.mrb[1].mxu1 }
 0x26d   : > { %1275 = vst [vmem:[%s2544_s29 + $0x20] sm:$0xff] %v958_v8  ;;  %v1074_v42 = vadd.f32 %v1073_v62, %v2540_v30  ;;  %v1075_v18 = vpop.f32.mrb[2].mxu1  ;;  %v2610_v8 = vrot.slane %v2532_v34, %v784_v31 }
 0x26e   : > { %1343 = vst [vmem:[%s2544_s29 + $0x240] sm:$0xff] %v1072_v46  ;;  %v1076_v45 = vadd.f32 %v1075_v18, %v2537_v4  ;;  %v1077_v14 = vpop.f32.mrb[3].mxu1 }
 0x26f   : > { %1344 = vst [vmem:[%s2544_s29 + $0x248] sm:$0xff] %v1074_v42  ;;  %v1078_v38 = vadd.f32 %v1077_v14, %v2540_v30  ;;  %v961_v44 = vpop.f32.mrb[4].mxu0 }
 0x270   : > { %1346 = vst [vmem:[%s2544_s29 + $0x258] sm:$0xff] %v1076_v45  ;;  %v962_v9 = vadd.f32 %v961_v44, %v2537_v4  ;;  %v963_v49 = vpop.f32.mrb[5].mxu0 }
 0x271   : > { %1347 = vst [vmem:[%s2544_s29 + $0x260] sm:$0xff] %v1078_v38  ;;  %v964_v40 = vadd.f32 %v963_v49, %v2540_v30  ;;  %v965_v48 = vpop.f32.mrb[6].mxu0 }
 0x272   : > { %1277 = vst [vmem:[%s2544_s29 + $0x30] sm:$0xff] %v962_v9  ;;  %v966_v27 = vadd.f32 %v965_v48, %v2537_v4  ;;  %v967_v24 = vpop.f32.mrb[7].mxu0 }
 0x273   : > { %1278 = vst [vmem:[%s2544_s29 + $0x38] sm:$0xff] %v964_v40  ;;  %v968_v15 = vadd.f32 %v967_v24, %v2540_v30  ;;  %v1081_v63 = vpop.f32.mrb[4].mxu1 }
 0x274   : > { %1280 = vst [vmem:[%s2544_s29 + $0x48] sm:$0xff] %v966_v27  ;;  %v1082_v52 = vadd.f32 %v1081_v63, %v2537_v4  ;;  %v1083_v21 = vpop.f32.mrb[5].mxu1 }
 0x275   : > { %1281 = vst [vmem:[%s2544_s29 + $0x50] sm:$0xff] %v968_v15  ;;  %v1084_v53 = vadd.f32 %v1083_v21, %v2540_v30  ;;  %v1085_v10 = vpop.f32.mrb[6].mxu1 }
 0x276   : > { %1349 = vst [vmem:[%s2544_s29 + $0x270] sm:$0xff] %v1082_v52  ;;  %v1086_v54 = vadd.f32 %v1085_v10, %v2537_v4  ;;  %v1087_v35 = vpop.f32.mrb[7].mxu1 }
 0x277   : > { %1350 = vst [vmem:[%s2544_s29 + $0x278] sm:$0xff] %v1084_v53  ;;  %v1088_v57 = vadd.f32 %v1087_v35, %v2540_v30  ;;  %v971_v20 = vpop.f32.mrb[8].mxu0 }
 0x278   : > { %1352 = vst [vmem:[%s2544_s29 + $0x288] sm:$0xff] %v1086_v54  ;;  %v972_v25 = vadd.f32 %v971_v20, %v2537_v4  ;;  %v973_v58 = vpop.f32.mrb[9].mxu0 }
 0x279   : > { %1353 = vst [vmem:[%s2544_s29 + $0x290] sm:$0xff] %v1088_v57  ;;  %v974_v51 = vadd.f32 %v973_v58, %v2540_v30  ;;  %v975_v60 = vpop.f32.mrb[10].mxu0 }
 0x27a   : > { %1283 = vst [vmem:[%s2544_s29 + $0x60] sm:$0xff] %v972_v25  ;;  %v976_v16 = vadd.f32 %v975_v60, %v2537_v4  ;;  %v977_v23 = vpop.f32.mrb[11].mxu0 }
 0x27b   : > { %1284 = vst [vmem:[%s2544_s29 + $0x68] sm:$0xff] %v974_v51  ;;  %v978_v47 = vadd.f32 %v977_v23, %v2540_v30  ;;  %v1091_v61 = vpop.f32.mrb[8].mxu1 }
 0x27c   : > { %1286 = vst [vmem:[%s2544_s29 + $0x78] sm:$0xff] %v976_v16  ;;  %v1092_v11 = vadd.f32 %v1091_v61, %v2537_v4  ;;  %v1093_v32 = vpop.f32.mrb[9].mxu1 }
 0x27d   : > { %1287 = vst [vmem:[%s2544_s29 + $0x80] sm:$0xff] %v978_v47  ;;  %v1094_v0 = vadd.f32 %v1093_v32, %v2540_v30  ;;  %v1095_v26 = vpop.f32.mrb[10].mxu1 }
 0x27e   : > { %1355 = vst [vmem:[%s2544_s29 + $0x2a0] sm:$0xff] %v1092_v11  ;;  %v1096_v1 = vadd.f32 %v1095_v26, %v2537_v4  ;;  %v1097_v33 = vpop.f32.mrb[11].mxu1 }
 0x27f   : > { %1356 = vst [vmem:[%s2544_s29 + $0x2a8] sm:$0xff] %v1094_v0  ;;  %v1098_v59 = vadd.f32 %v1097_v33, %v2540_v30  ;;  %v981_v17 = vpop.f32.mrb[12].mxu0 }
 0x280   : > { %1358 = vst [vmem:[%s2544_s29 + $0x2b8] sm:$0xff] %v1096_v1  ;;  %v982_v12 = vadd.f32 %v981_v17, %v2537_v4  ;;  %v983_v2 = vpop.f32.mrb[13].mxu0 }
 0x281   : > { %1359 = vst [vmem:[%s2544_s29 + $0x2c0] sm:$0xff] %v1098_v59  ;;  %v984_v3 = vadd.f32 %v983_v2, %v2540_v30  ;;  %v985_v50 = vpop.f32.mrb[14].mxu0 }
 0x282   : > { %1289 = vst [vmem:[%s2544_s29 + $0x90] sm:$0xff] %v982_v12  ;;  %v986_v6 = vadd.f32 %v985_v50, %v2537_v4  ;;  %v987_v5 = vpop.f32.mrb[15].mxu0 }
 0x283   : > { %1290 = vst [vmem:[%s2544_s29 + $0x98] sm:$0xff] %v984_v3  ;;  %v988_v7 = vadd.f32 %v987_v5, %v2540_v30  ;;  %v1101_v28 = vpop.f32.mrb[12].mxu1 }
 0x284   : > { %1292 = vst [vmem:[%s2544_s29 + $0xa8] sm:$0xff] %v986_v6  ;;  %v1102_v29 = vadd.f32 %v1101_v28, %v2537_v4  ;;  %v1103_v39 = vpop.f32.mrb[13].mxu1 }
 0x285   : > { %1293 = vst [vmem:[%s2544_s29 + $0xb0] sm:$0xff] %v988_v7  ;;  %v1104_v56 = vadd.f32 %v1103_v39, %v2540_v30  ;;  %v1105_v43 = vpop.f32.mrb[14].mxu1 }
 0x286   : > { %1361 = vst [vmem:[%s2544_s29 + $0x2d0] sm:$0xff] %v1102_v29  ;;  %v1106_v36 = vadd.f32 %v1105_v43, %v2537_v4  ;;  %v1107_v13 = vpop.f32.mrb[15].mxu1 }
 0x287   : > { %1362 = vst [vmem:[%s2544_s29 + $0x2d8] sm:$0xff] %v1104_v56  ;;  %v1108_v41 = vadd.f32 %v1107_v13, %v2540_v30  ;;  %v991_v37 = vpop.f32.mrb[16].mxu0 }
 0x288   : > { %1364 = vst [vmem:[%s2544_s29 + $0x2e8] sm:$0xff] %v1106_v36  ;;  %v992_v55 = vadd.f32 %v991_v37, %v2537_v4  ;;  %v993_v22 = vpop.f32.mrb[17].mxu0 }
 0x289   : > { %1365 = vst [vmem:[%s2544_s29 + $0x2f0] sm:$0xff] %v1108_v41  ;;  %v994_v19 = vadd.f32 %v993_v22, %v2540_v30  ;;  %v995_v46 = vpop.f32.mrb[18].mxu0 }
 0x28a   : > { %1295 = vst [vmem:[%s2544_s29 + $0xc0] sm:$0xff] %v992_v55  ;;  %v996_v62 = vadd.f32 %v995_v46, %v2537_v4  ;;  %v997_v42 = vpop.f32.mrb[19].mxu0 }
 0x28b   : > { %1296 = vst [vmem:[%s2544_s29 + $0xc8] sm:$0xff] %v994_v19  ;;  %v998_v18 = vadd.f32 %v997_v42, %v2540_v30  ;;  %v1549_v45 = vpop.f32.mrb[16].mxu1 }
 0x28c   : > { %1298 = vst [vmem:[%s2544_s29 + $0xd8] sm:$0xff] %v996_v62  ;;  %v1153_v34 = vadd.f32 %v1549_v45, %v2610_v8  ;;  %v1144_v14 = vpop.f32.mrb[17].mxu1 }
 0x28d   : > { %1299 = vst [vmem:[%s2544_s29 + $0xe0] sm:$0xff] %v998_v18  ;;  %v1145_v38 = vadd.f32 %v1144_v14, %v2610_v8  ;;  %v1550_v44 = vpop.f32.mrb[18].mxu1 }
 0x28e   : > { %1279 = vst [vmem:[%s2544_s29 + $0x40] sm:$0xff] %v1153_v34  ;;  %v1156_v9 = vadd.f32 %v1550_v44, %v2610_v8  ;;  %v1147_v49 = vpop.f32.mrb[19].mxu1 }
 0x28f   : > { %1273 = vst [vmem:[%s2544_s29 + $0x10] sm:$0xff] %v1145_v38  ;;  %v1148_v40 = vadd.f32 %v1147_v49, %v2610_v8  ;;  %v1001_v48 = vpop.f32.mrb[20].mxu0 }
 0x290   : > { %1282 = vst [vmem:[%s2544_s29 + $0x58] sm:$0xff] %v1156_v9  ;;  %v1002_v27 = vadd.f32 %v1001_v48, %v2537_v4  ;;  %v1003_v24 = vpop.f32.mrb[21].mxu0 }
 0x291   : > { %1276 = vst [vmem:[%s2544_s29 + $0x28] sm:$0xff] %v1148_v40  ;;  %v1004_v15 = vadd.f32 %v1003_v24, %v2540_v30  ;;  %v1005_v63 = vpop.f32.mrb[22].mxu0 }
 0x292   : > { %1301 = vst [vmem:[%s2544_s29 + $0xf0] sm:$0xff] %v1002_v27  ;;  %v1006_v52 = vadd.f32 %v1005_v63, %v2537_v4  ;;  %v1007_v21 = vpop.f32.mrb[23].mxu0 }
 0x293   : > { %1302 = vst [vmem:[%s2544_s29 + $0xf8] sm:$0xff] %v1004_v15  ;;  %v1008_v53 = vadd.f32 %v1007_v21, %v2540_v30  ;;  %v1553_v10 = vpop.f32.mrb[20].mxu1 }
 0x294   : > { %1304 = vst [vmem:[%s2544_s29 + $0x108] sm:$0xff] %v1006_v52  ;;  %v1169_v54 = vadd.f32 %v1553_v10, %v2610_v8  ;;  %v1160_v35 = vpop.f32.mrb[21].mxu1 }
 0x295   : > { %1305 = vst [vmem:[%s2544_s29 + $0x110] sm:$0xff] %v1008_v53  ;;  %v1161_v57 = vadd.f32 %v1160_v35, %v2610_v8  ;;  %v1554_v20 = vpop.f32.mrb[22].mxu1 }
 0x296   : > { %1291 = vst [vmem:[%s2544_s29 + $0xa0] sm:$0xff] %v1169_v54  ;;  %v1172_v25 = vadd.f32 %v1554_v20, %v2610_v8  ;;  %v1163_v58 = vpop.f32.mrb[23].mxu1 }
 0x297   : > { %1285 = vst [vmem:[%s2544_s29 + $0x70] sm:$0xff] %v1161_v57  ;;  %v1164_v51 = vadd.f32 %v1163_v58, %v2610_v8  ;;  %v1011_v60 = vpop.f32.mrb[24].mxu0 }
 0x298   : > { %1294 = vst [vmem:[%s2544_s29 + $0xb8] sm:$0xff] %v1172_v25  ;;  %v1012_v16 = vadd.f32 %v1011_v60, %v2537_v4  ;;  %v1013_v23 = vpop.f32.mrb[25].mxu0 }
 0x299   : > { %1288 = vst [vmem:[%s2544_s29 + $0x88] sm:$0xff] %v1164_v51  ;;  %v1014_v47 = vadd.f32 %v1013_v23, %v2540_v30  ;;  %v1015_v61 = vpop.f32.mrb[26].mxu0 }
 0x29a   : > { %1307 = vst [vmem:[%s2544_s29 + $0x120] sm:$0xff] %v1012_v16  ;;  %v1016_v11 = vadd.f32 %v1015_v61, %v2537_v4  ;;  %v1017_v32 = vpop.f32.mrb[27].mxu0 }
 0x29b   : > { %1308 = vst [vmem:[%s2544_s29 + $0x128] sm:$0xff] %v1014_v47  ;;  %v1018_v0 = vadd.f32 %v1017_v32, %v2540_v30  ;;  %v1557_v26 = vpop.f32.mrb[24].mxu1 }
 0x29c   : > { %1310 = vst [vmem:[%s2544_s29 + $0x138] sm:$0xff] %v1016_v11  ;;  %v1185_v1 = vadd.f32 %v1557_v26, %v2610_v8  ;;  %v1176_v33 = vpop.f32.mrb[25].mxu1 }
 0x29d   : > { %1311 = vst [vmem:[%s2544_s29 + $0x140] sm:$0xff] %v1018_v0  ;;  %v1177_v59 = vadd.f32 %v1176_v33, %v2610_v8  ;;  %v1558_v17 = vpop.f32.mrb[26].mxu1 }
 0x29e   : > { %1303 = vst [vmem:[%s2544_s29 + $0x100] sm:$0xff] %v1185_v1  ;;  %v1188_v12 = vadd.f32 %v1558_v17, %v2610_v8  ;;  %v1179_v2 = vpop.f32.mrb[27].mxu1 }
 0x29f   : > { %1297 = vst [vmem:[%s2544_s29 + $0xd0] sm:$0xff] %v1177_v59  ;;  %v1180_v3 = vadd.f32 %v1179_v2, %v2610_v8  ;;  %v1021_v50 = vpop.f32.mrb[28].mxu0 }
 0x2a0   : > { %1306 = vst [vmem:[%s2544_s29 + $0x118] sm:$0xff] %v1188_v12  ;;  %v1022_v6 = vadd.f32 %v1021_v50, %v2537_v4  ;;  %v1023_v5 = vpop.f32.mrb[29].mxu0 }
 0x2a1   : > { %1300 = vst [vmem:[%s2544_s29 + $0xe8] sm:$0xff] %v1180_v3  ;;  %v1024_v7 = vadd.f32 %v1023_v5, %v2540_v30  ;;  %v1025_v28 = vpop.f32.mrb[30].mxu0 }
 0x2a2   : > { %1313 = vst [vmem:[%s2544_s29 + $0x150] sm:$0xff] %v1022_v6  ;;  %v1026_v29 = vadd.f32 %v1025_v28, %v2537_v4  ;;  %v1027_v39 = vpop.f32.mrb[31].mxu0 }
 0x2a3   : > { %1314 = vst [vmem:[%s2544_s29 + $0x158] sm:$0xff] %v1024_v7  ;;  %v1028_v31 = vadd.f32 %v1027_v39, %v2540_v30  ;;  %v1561_v56 = vpop.f32.mrb[28].mxu1 }
 0x2a4   : > { %1316 = vst [vmem:[%s2544_s29 + $0x168] sm:$0xff] %v1026_v29  ;;  %v1201_v43 = vadd.f32 %v1561_v56, %v2610_v8  ;;  %v1192_v36 = vpop.f32.mrb[29].mxu1 }
 0x2a5   : > { %1317 = vst [vmem:[%s2544_s29 + $0x170] sm:$0xff] %v1028_v31  ;;  %v1193_v13 = vadd.f32 %v1192_v36, %v2610_v8  ;;  %v1562_v41 = vpop.f32.mrb[30].mxu1 }
 0x2a6   : > { %1315 = vst [vmem:[%s2544_s29 + $0x160] sm:$0xff] %v1201_v43  ;;  %v1204_v37 = vadd.f32 %v1562_v41, %v2610_v8  ;;  %v1195_v55 = vpop.f32.mrb[31].mxu1 }
 0x2a7   : > { %1309 = vst [vmem:[%s2544_s29 + $0x130] sm:$0xff] %v1193_v13  ;;  %v1196_v22 = vadd.f32 %v1195_v55, %v2610_v8  ;;  %v1031_v19 = vpop.f32.mrb[32].mxu0 }
 0x2a8   : > { %1318 = vst [vmem:[%s2544_s29 + $0x178] sm:$0xff] %v1204_v37  ;;  %v1032_v46 = vadd.f32 %v1031_v19, %v2537_v4  ;;  %v1033_v62 = vpop.f32.mrb[33].mxu0 }
 0x2a9   : > { %1312 = vst [vmem:[%s2544_s29 + $0x148] sm:$0xff] %v1196_v22  ;;  %v1034_v42 = vadd.f32 %v1033_v62, %v2540_v30  ;;  %v1035_v18 = vpop.f32.mrb[34].mxu0 }
 0x2aa   : > { %1319 = vst [vmem:[%s2544_s29 + $0x180] sm:$0xff] %v1032_v46  ;;  %v1036_v45 = vadd.f32 %v1035_v18, %v2537_v4  ;;  %v1037_v34 = vpop.f32.mrb[35].mxu0 }
 0x2ab   : > { %1320 = vst [vmem:[%s2544_s29 + $0x188] sm:$0xff] %v1034_v42  ;;  %v1038_v14 = vadd.f32 %v1037_v34, %v2540_v30  ;;  %v1565_v38 = vpop.f32.mrb[32].mxu1 }
 0x2ac   : > { %1322 = vst [vmem:[%s2544_s29 + $0x198] sm:$0xff] %v1036_v45  ;;  %v1217_v44 = vadd.f32 %v1565_v38, %v2610_v8  ;;  %v1208_v9 = vpop.f32.mrb[33].mxu1 }
 0x2ad   : > { %1323 = vst [vmem:[%s2544_s29 + $0x1a0] sm:$0xff] %v1038_v14  ;;  %v1209_v49 = vadd.f32 %v1208_v9, %v2610_v8  ;;  %v1566_v40 = vpop.f32.mrb[34].mxu1 }
 0x2ae   : > { %1327 = vst [vmem:[%s2544_s29 + $0x1c0] sm:$0xff] %v1217_v44  ;;  %v1220_v48 = vadd.f32 %v1566_v40, %v2610_v8  ;;  %v1211_v27 = vpop.f32.mrb[35].mxu1 }
 0x2af   : > { %1321 = vst [vmem:[%s2544_s29 + $0x190] sm:$0xff] %v1209_v49  ;;  %v1212_v24 = vadd.f32 %v1211_v27, %v2610_v8  ;;  %v1041_v15 = vpop.f32.mrb[36].mxu0 }
 0x2b0   : > { %1330 = vst [vmem:[%s2544_s29 + $0x1d8] sm:$0xff] %v1220_v48  ;;  %v1042_v63 = vadd.f32 %v1041_v15, %v2537_v4  ;;  %v1043_v52 = vpop.f32.mrb[37].mxu0 }
 0x2b1   : > { %1324 = vst [vmem:[%s2544_s29 + $0x1a8] sm:$0xff] %v1212_v24  ;;  %v1044_v21 = vadd.f32 %v1043_v52, %v2540_v30  ;;  %v1045_v53 = vpop.f32.mrb[38].mxu0 }
 0x2b2   : > { %1325 = vst [vmem:[%s2544_s29 + $0x1b0] sm:$0xff] %v1042_v63  ;;  %v1046_v10 = vadd.f32 %v1045_v53, %v2537_v4  ;;  %v1047_v54 = vpop.f32.mrb[39].mxu0 }
 0x2b3   : > { %1326 = vst [vmem:[%s2544_s29 + $0x1b8] sm:$0xff] %v1044_v21  ;;  %v1048_v35 = vadd.f32 %v1047_v54, %v2540_v30  ;;  %v1569_v57 = vpop.f32.mrb[36].mxu1 }
 0x2b4   : > { %1328 = vst [vmem:[%s2544_s29 + $0x1c8] sm:$0xff] %v1046_v10  ;;  %v1233_v20 = vadd.f32 %v1569_v57, %v2610_v8  ;;  %v1224_v25 = vpop.f32.mrb[37].mxu1 }
 0x2b5   : > { %1329 = vst [vmem:[%s2544_s29 + $0x1d0] sm:$0xff] %v1048_v35  ;;  %v1225_v58 = vadd.f32 %v1224_v25, %v2610_v8  ;;  %v1570_v51 = vpop.f32.mrb[38].mxu1 }
 0x2b6   : > { %1339 = vst [vmem:[%s2544_s29 + $0x220] sm:$0xff] %v1233_v20  ;;  %v1236_v60 = vadd.f32 %v1570_v51, %v2610_v8  ;;  %v1227_v16 = vpop.f32.mrb[39].mxu1 }
 0x2b7   : > { %1333 = vst [vmem:[%s2544_s29 + $0x1f0] sm:$0xff] %v1225_v58  ;;  %v1228_v23 = vadd.f32 %v1227_v16, %v2610_v8  ;;  %v1051_v47 = vpop.f32.mrb[40].mxu0 }
 0x2b8   : > { %1342 = vst [vmem:[%s2544_s29 + $0x238] sm:$0xff] %v1236_v60  ;;  %v1052_v61 = vadd.f32 %v1051_v47, %v2537_v4  ;;  %v1053_v11 = vpop.f32.mrb[41].mxu0 }
 0x2b9   : > { %1336 = vst [vmem:[%s2544_s29 + $0x208] sm:$0xff] %v1228_v23  ;;  %v1054_v32 = vadd.f32 %v1053_v11, %v2540_v30  ;;  %v1055_v0 = vpop.f32.mrb[42].mxu0 }
 0x2ba   : > { %1331 = vst [vmem:[%s2544_s29 + $0x1e0] sm:$0xff] %v1052_v61  ;;  %v1056_v26 = vadd.f32 %v1055_v0, %v2537_v4  ;;  %v1057_v1 = vpop.f32.mrb[43].mxu0 }
 0x2bb   : > { %1332 = vst [vmem:[%s2544_s29 + $0x1e8] sm:$0xff] %v1054_v32  ;;  %v1058_v33 = vadd.f32 %v1057_v1, %v2540_v30  ;;  %v1573_v59 = vpop.f32.mrb[40].mxu1 }
 0x2bc   : > { %1334 = vst [vmem:[%s2544_s29 + $0x1f8] sm:$0xff] %v1056_v26  ;;  %v1249_v17 = vadd.f32 %v1573_v59, %v2610_v8  ;;  %v1240_v12 = vpop.f32.mrb[41].mxu1 }
 0x2bd   : > { %1335 = vst [vmem:[%s2544_s29 + $0x200] sm:$0xff] %v1058_v33  ;;  %v1241_v2 = vadd.f32 %v1240_v12, %v2610_v8  ;;  %v1574_v3 = vpop.f32.mrb[42].mxu1 }
 0x2be   : > { %1351 = vst [vmem:[%s2544_s29 + $0x280] sm:$0xff] %v1249_v17  ;;  %v1252_v50 = vadd.f32 %v1574_v3, %v2610_v8  ;;  %v1243_v6 = vpop.f32.mrb[43].mxu1 }
 0x2bf   : > { %1345 = vst [vmem:[%s2544_s29 + $0x250] sm:$0xff] %v1241_v2  ;;  %v1244_v5 = vadd.f32 %v1243_v6, %v2610_v8  ;;  %v1061_v7 = vpop.f32.mrb[44].mxu0 }
 0x2c0   : > { %1354 = vst [vmem:[%s2544_s29 + $0x298] sm:$0xff] %v1252_v50  ;;  %v1062_v28 = vadd.f32 %v1061_v7, %v2537_v4  ;;  %v1063_v29 = vpop.f32.mrb[45].mxu0 }
 0x2c1   : > { %1348 = vst [vmem:[%s2544_s29 + $0x268] sm:$0xff] %v1244_v5  ;;  %v1064_v39 = vadd.f32 %v1063_v29, %v2540_v30  ;;  %v1065_v31 = vpop.f32.mrb[46].mxu0 }
 0x2c2   : > { %1337 = vst [vmem:[%s2544_s29 + $0x210] sm:$0xff] %v1062_v28  ;;  %v1066_v56 = vadd.f32 %v1065_v31, %v2537_v4  ;;  %v1067_v43 = vpop.f32.mrb[47].mxu0 }
 0x2c3   : > { %1338 = vst [vmem:[%s2544_s29 + $0x218] sm:$0xff] %v1064_v39  ;;  %v1068_v36 = vadd.f32 %v1067_v43, %v2540_v30  ;;  %v1577_v13 = vpop.f32.mrb[44].mxu1 }
 0x2c4   : > { %1340 = vst [vmem:[%s2544_s29 + $0x228] sm:$0xff] %v1066_v56  ;;  %v1265_v41 = vadd.f32 %v1577_v13, %v2610_v8  ;;  %v1256_v37 = vpop.f32.mrb[45].mxu1 }
 0x2c5   : > { %1341 = vst [vmem:[%s2544_s29 + $0x230] sm:$0xff] %v1068_v36  ;;  %v1257_v55 = vadd.f32 %v1256_v37, %v2610_v8  ;;  %v1578_v4 = vpop.f32.mrb[46].mxu1 }
 0x2c6   : > { %1363 = vst [vmem:[%s2544_s29 + $0x2e0] sm:$0xff] %v1265_v41  ;;  %v1268_v22 = vadd.f32 %v1578_v4, %v2610_v8  ;;  %v1259_v19 = vpop.f32.mrb[47].mxu1 }
 0x2c7   : > { %1357 = vst [vmem:[%s2544_s29 + $0x2b0] sm:$0xff] %v1257_v55  ;;  %v1260_v30 = vadd.f32 %v1259_v19, %v2610_v8 }
 0x2c8   : > { %1366 = vst [vmem:[%s2544_s29 + $0x2f8] sm:$0xff] %v1268_v22 }
 0x2c9   : > { %1360 = vst [vmem:[%s2544_s29 + $0x2c8] sm:$0xff] %v1260_v30 }
 0x2ca   : > { %1828 = shalt.err (!%p1825_p7)
}
 0x2cb   : > { %s1829_s14 = scalar_lea.hbm %s2741_s17, 12288  ;;  %s1833_s15 = scalar_lea.hbm %s2796_s5, 24576 }
 0x2cc   : > { %p1830_p9 = scmp.ne.s32.totalorder %s2741_s17, %s1829_s14  ;;  %p1834_p5 = scmp.lt.u32.totalorder %s2741_s17, %s2796_s5 }
 0x2cd   : > { %p1835_p11 = scmp.lt.u32.totalorder %s1833_s15, %s1829_s14  ;;  %p1837_p4 = scmp.lt.u32.totalorder %s1829_s14, %s2741_s17 }
 0x2ce   : > { %p1831_p2 = pnand %p1830_p9, %p2018_p12 }
 0x2cf   : > { %p1836_p1 = por %p1835_p11, %p1834_p5 }
 0x2d0   : > { %p1832_p0 = pneg %p1831_p2 }
 0x2d1   : > { %p1838_p6 = por %p1837_p4, %p1836_p1 }
 0x2d3   : > { %p1839_p8 = pnand %p1838_p6, %p1832_p0 }
 0x2d5   : > { %1842 = shalt.err (!%p1839_p8)
}
 0x2d6   : > { %s1895_s13 = smov 384   ;;  %s1896_s22 = smov 24  }
 0x2d7   : > { %1603 = dma.vmem_to_hbm [thread:$0]  (%p2018_p12), %s2745_s28, 12288, %s2741_s17, %s1368_s27, %s1895_s13, %s1895_s13, %s1896_s22  }
 0x2d8 PF: > { %s1397_s16 = sand.u32 1, %s1873_s18   ;;  %p2811_p10 = scmp.ne.s32.totalorder %s2801_s25, 0 }
 0x2d9   : > { %p2812_p13 = scmp.ge.s32.totalorder %s1885_s21, 2  ;;  %s1398_s11 = scalar_lea.sflag [#allocation4], %s1397_s16 }
 0x2db   : > { %p1614_p3 = pnand %p2812_p13, %p2811_p10 }
 0x2dd   : > { %1868 = dma.done.wait (!%p1614_p3), %s1398_s11, 12288  }
 0x2de   : > { %1870 = vsyncadd (!%p1614_p3), %s1398_s11, 4294955008  ;;  %p19_p7 = scmp.ge.s32.totalorder %s1983_s30, 4   ;;  %s2813_s18 = smov %s1877_s19 }
 0x2df   : > { %s2814_s19 = smov %s1881_s20  ;;  %s2815_s20 = smov %s2014_s8 }
 0x2e0   : > { %s2816_s21 = smov %s1983_s30  ;;  %21 = sbr.rel (!%p19_p7) target bundleno = 6 (0x6), region = 89 }
 0x2e7   :  { %1403 = vsyncpa [#allocation3], 1 }
 0x2e8   :  { %1405 = vsyncpa [#allocation3 + $0x1], 1 }
 0x2e9   :  { %1406 = vsyncpa [#allocation6], 1 }
 0x2ea   :  { %1407 = vsyncpa [#allocation4], 1 }
 0x2eb   :  { %1409 = vsyncpa [#allocation4 + $0x1], 1 }

</bundles_post_ra>
